<compile_context>
chip_gen: v5e
topology: v5e:2x2
jax: 0.10.0
libtpu: 0.0.40
codegen_flags: <defaults>
</compile_context>

<pallas_src>
import jax
import jax.numpy as jnp
from jax import lax
from jax.experimental import pallas as pl
from jax.experimental.pallas import tpu as pltpu


def bridge_up_kernel(xp_ref, w1_ref, b1_ref, w2_ref, b2_ref, out_ref):
    # xp_ref : (1, H+2, W+2, Cin)   pre-padded input tile (one batch element)
    # w1_ref : (9*Cin, Cin)         im2col 3x3 conv weights, rows ordered k = 3*dy + dx
    # b1_ref : (1, Cin)
    # w2_ref : (Cin, 4*Cout)        fused 2x2 transpose-conv weights, cols k = 2*dy + dx
    # b2_ref : (1, 4*Cout)
    # out_ref: (1, H*W, 4*Cout)     lane-dense fused output (sub-pixel planes on lanes)
    Hp = xp_ref.shape[1]
    Wp = xp_ref.shape[2]
    Cin = xp_ref.shape[3]
    H, W = Hp - 2, Wp - 2

    xp = xp_ref[0]  # (H+2, W+2, Cin)

    # im2col slab: concat the 9 shifted windows along the channel (lane) axis.
    patches = [
        xp[dy:dy + H, dx:dx + W, :].reshape(H * W, Cin)
        for dy in range(3) for dx in range(3)
    ]
    col = jnp.concatenate(patches, axis=-1)          # (H*W, 9*Cin)

    # 3x3 conv as one matmul (K = 9*Cin), bias + ReLU in f32.
    h = jnp.dot(col, w1_ref[...], preferred_element_type=jnp.float32) + b1_ref[...]
    h = jnp.maximum(h, 0.0)                          # (H*W, Cin)

    # ConvTranspose2d k=2 s=2: one matmul producing all 4 sub-pixel planes at once.
    y = jnp.dot(h, w2_ref[...], preferred_element_type=jnp.float32) + b2_ref[...]
    out_ref[0] = y.astype(out_ref.dtype)             # (H*W, 4*Cout)


def bridge_up_pallas(x_nchw, w1, b1, w2, b2):
    """x_nchw: (N, Cin, H, W). w1: (Cin, Cin, 3, 3) [OIHW], b1: (Cin,),
    w2: (Cin, Cout, 2, 2) [IOHW, PyTorch ConvTranspose2d], b2: (Cout,).
    Returns (N, Cout, 2H, 2W), matching PyTorch semantics."""
    N, Cin, H, W = x_nchw.shape
    Cout = w2.shape[1]

    # NHWC + zero-pad once in the wrapper (padding=1) -> no in-kernel scratch/zeroing.
    x = jnp.transpose(x_nchw, (0, 2, 3, 1))                               # (N, H, W, Cin)
    xp = jnp.pad(x, ((0, 0), (1, 1), (1, 1), (0, 0)))                     # (N, H+2, W+2, Cin)

    # Weight prep (layout plumbing outside the kernel).
    w1_r = jnp.transpose(w1, (2, 3, 1, 0)).reshape(9 * Cin, Cin)          # row = (3*dy+dx)*Cin + ci
    w2_r = jnp.transpose(w2, (0, 2, 3, 1)).reshape(Cin, 4 * Cout)         # col = (2*dy+dx)*Cout + co
    b1_r = b1.reshape(1, Cin)
    b2_r = jnp.tile(b2, 4).reshape(1, 4 * Cout)

    out = pl.pallas_call(
        bridge_up_kernel,
        out_shape=jax.ShapeDtypeStruct((N, H * W, 4 * Cout), x.dtype),
        grid_spec=pltpu.PrefetchScalarGridSpec(
            num_scalar_prefetch=0,
            grid=(N,),
            in_specs=[
                pl.BlockSpec((1, H + 2, W + 2, Cin), lambda n: (n, 0, 0, 0)),
                pl.BlockSpec((9 * Cin, Cin), lambda n: (0, 0)),
                pl.BlockSpec((1, Cin), lambda n: (0, 0)),
                pl.BlockSpec((Cin, 4 * Cout), lambda n: (0, 0)),
                pl.BlockSpec((1, 4 * Cout), lambda n: (0, 0)),
            ],
            out_specs=pl.BlockSpec((1, H * W, 4 * Cout), lambda n: (n, 0, 0)),
        ),
        compiler_params=pltpu.CompilerParams(
            dimension_semantics=("parallel",),  # batch elements are independent (v7x: 2 TCs)
        ),
    )(xp, w1_r, b1_r, w2_r, b2_r)

    # Glue: de-interleave the fused sub-pixel planes -> (N, 2H, 2W, Cout) -> NCHW.
    out = out.reshape(N, H, W, 2, 2, Cout)            # (n, i, j, dy, dx, co)
    out = jnp.transpose(out, (0, 1, 3, 2, 4, 5)).reshape(N, 2 * H, 2 * W, Cout)
    return jnp.transpose(out, (0, 3, 1, 2))


def bridge_up_ref(x_nchw, w1, b1, w2, b2):
    """Pure-JAX reference with PyTorch NCHW/OIHW conventions."""
    h = lax.conv_general_dilated(
        x_nchw, w1, window_strides=(1, 1), padding=((1, 1), (1, 1)),
        dimension_numbers=("NCHW", "OIHW", "NCHW"))
    h = jax.nn.relu(h + b1[None, :, None, None])
    # ConvTranspose2d k=2 s=2 (non-overlapping): out[n,co,2i+dy,2j+dx] = sum_ci h*w2
    N, Cin, H, W = h.shape
    Cout = w2.shape[1]
    y = jnp.einsum("nxhw,xoab->nohawb", h, w2)        # (N, Cout, H, 2, W, 2)
    y = y.reshape(N, Cout, 2 * H, 2 * W)
    return y + b2[None, :, None, None]


if __name__ == "__main__":
    N, Cin, Cout, H, W = 2, 4, 8, 16, 16

    key = jax.random.PRNGKey(0)
    k1, k2, k3, k4, k5 = jax.random.split(key, 5)
    x = jax.random.normal(k1, (N, Cin, H, W), jnp.float32)
    w1 = jax.random.normal(k2, (Cin, Cin, 3, 3), jnp.float32) * 0.1   # Conv2d weight (OIHW)
    b1 = jax.random.normal(k3, (Cin,), jnp.float32) * 0.1
    w2 = jax.random.normal(k4, (Cin, Cout, 2, 2), jnp.float32) * 0.1  # ConvTranspose2d weight (IOHW)
    b2 = jax.random.normal(k5, (Cout,), jnp.float32) * 0.1

    out = jax.jit(bridge_up_pallas)(x, w1, b1, w2, b2)
    out = jax.block_until_ready(out)

    ref = bridge_up_ref(x, w1, b1, w2, b2)
    assert out.shape == (N, Cout, 2 * H, 2 * W), out.shape
    assert jnp.allclose(out, ref, atol=1e-4, rtol=1e-4), float(jnp.max(jnp.abs(out - ref)))

    print("KERNEL_OK")
</pallas_src>

<mosaic_0001>
module attributes {stable_mosaic.version = 11 : i64} {
  func.func @bridge_up_kernel(%arg0: i32, %arg1: memref<1x18x18x4xf32, #tpu.memory_space<vmem>>, %arg2: memref<36x4xf32, #tpu.memory_space<vmem>>, %arg3: memref<1x4xf32, #tpu.memory_space<vmem>>, %arg4: memref<4x32xf32, #tpu.memory_space<vmem>>, %arg5: memref<1x32xf32, #tpu.memory_space<vmem>>, %arg6: memref<1x256x32xf32, #tpu.memory_space<vmem>>) attributes {dimension_semantics = [#tpu.dimension_semantics<parallel>], iteration_bounds = array<i64: 2>, scalar_prefetch = 0 : i64, scratch_operands = 0 : i64, tpu.core_type = #tpu.core_type<tc>, window_params = [{transform_indices = @transform_0, window_bounds = array<i64: 1, 18, 18, 4>}, {pipeline_mode = #tpu.pipeline_mode<synchronous>, transform_indices = @transform_1, window_bounds = array<i64: 36, 4>}, {pipeline_mode = #tpu.pipeline_mode<synchronous>, transform_indices = @transform_2, window_bounds = array<i64: 1, 4>}, {pipeline_mode = #tpu.pipeline_mode<synchronous>, transform_indices = @transform_3, window_bounds = array<i64: 4, 32>}, {pipeline_mode = #tpu.pipeline_mode<synchronous>, transform_indices = @transform_4, window_bounds = array<i64: 1, 32>}, {transform_indices = @transform_5, window_bounds = array<i64: 1, 256, 32>}]} {
    %c0 = arith.constant 0 : index
    %c0_0 = arith.constant 0 : index
    %c0_1 = arith.constant 0 : index
    %c0_2 = arith.constant 0 : index
    %0 = vector.load %arg1[%c0, %c0_0, %c0_1, %c0_2] : memref<1x18x18x4xf32, #tpu.memory_space<vmem>>, vector<1x18x18x4xf32>
    %1 = vector.shape_cast %0 : vector<1x18x18x4xf32> to vector<18x18x4xf32>
    %2 = vector.extract_strided_slice %1 {offsets = [0, 0, 0], sizes = [16, 16, 4], strides = [1, 1, 1]} : vector<18x18x4xf32> to vector<16x16x4xf32>
    %3 = vector.shape_cast %2 : vector<16x16x4xf32> to vector<256x4xf32>
    %4 = vector.extract_strided_slice %1 {offsets = [0, 1, 0], sizes = [16, 16, 4], strides = [1, 1, 1]} : vector<18x18x4xf32> to vector<16x16x4xf32>
    %5 = vector.shape_cast %4 : vector<16x16x4xf32> to vector<256x4xf32>
    %6 = vector.extract_strided_slice %1 {offsets = [0, 2, 0], sizes = [16, 16, 4], strides = [1, 1, 1]} : vector<18x18x4xf32> to vector<16x16x4xf32>
    %7 = vector.shape_cast %6 : vector<16x16x4xf32> to vector<256x4xf32>
    %8 = vector.extract_strided_slice %1 {offsets = [1, 0, 0], sizes = [16, 16, 4], strides = [1, 1, 1]} : vector<18x18x4xf32> to vector<16x16x4xf32>
    %9 = vector.shape_cast %8 : vector<16x16x4xf32> to vector<256x4xf32>
    %10 = vector.extract_strided_slice %1 {offsets = [1, 1, 0], sizes = [16, 16, 4], strides = [1, 1, 1]} : vector<18x18x4xf32> to vector<16x16x4xf32>
    %11 = vector.shape_cast %10 : vector<16x16x4xf32> to vector<256x4xf32>
    %12 = vector.extract_strided_slice %1 {offsets = [1, 2, 0], sizes = [16, 16, 4], strides = [1, 1, 1]} : vector<18x18x4xf32> to vector<16x16x4xf32>
    %13 = vector.shape_cast %12 : vector<16x16x4xf32> to vector<256x4xf32>
    %14 = vector.extract_strided_slice %1 {offsets = [2, 0, 0], sizes = [16, 16, 4], strides = [1, 1, 1]} : vector<18x18x4xf32> to vector<16x16x4xf32>
    %15 = vector.shape_cast %14 : vector<16x16x4xf32> to vector<256x4xf32>
    %16 = vector.extract_strided_slice %1 {offsets = [2, 1, 0], sizes = [16, 16, 4], strides = [1, 1, 1]} : vector<18x18x4xf32> to vector<16x16x4xf32>
    %17 = vector.shape_cast %16 : vector<16x16x4xf32> to vector<256x4xf32>
    %18 = vector.extract_strided_slice %1 {offsets = [2, 2, 0], sizes = [16, 16, 4], strides = [1, 1, 1]} : vector<18x18x4xf32> to vector<16x16x4xf32>
    %19 = vector.shape_cast %18 : vector<16x16x4xf32> to vector<256x4xf32>
    %20 = tpu.concatenate %3, %5, %7, %9, %11, %13, %15, %17, %19 in 1 : vector<256x4xf32>, vector<256x4xf32>, vector<256x4xf32>, vector<256x4xf32>, vector<256x4xf32>, vector<256x4xf32>, vector<256x4xf32>, vector<256x4xf32>, vector<256x4xf32> -> vector<256x36xf32>
    %c0_3 = arith.constant 0 : index
    %c0_4 = arith.constant 0 : index
    %21 = vector.load %arg2[%c0_3, %c0_4] : memref<36x4xf32, #tpu.memory_space<vmem>>, vector<36x4xf32>
    %cst = arith.constant dense<0.000000e+00> : vector<256x4xf32>
    %22 = tpu.matmul %20, %21, %cst {dimension_numbers = #tpu.dot_dimension_numbers<[1], [0], [0], [1], [0, 0, 1, 1], [], []>} : vector<256x36xf32>, vector<36x4xf32>, vector<256x4xf32> -> vector<256x4xf32>
    %c0_5 = arith.constant 0 : index
    %c0_6 = arith.constant 0 : index
    %23 = vector.load %arg3[%c0_5, %c0_6] : memref<1x4xf32, #tpu.memory_space<vmem>>, vector<1x4xf32>
    %24 = vector.broadcast %23 : vector<1x4xf32> to vector<256x4xf32>
    %25 = arith.addf %22, %24 : vector<256x4xf32>
    %cst_7 = arith.constant 0.000000e+00 : f32
    %26 = vector.broadcast %cst_7 : f32 to vector<256x4xf32>
    %27 = arith.maximumf %25, %26 : vector<256x4xf32>
    %c0_8 = arith.constant 0 : index
    %c0_9 = arith.constant 0 : index
    %28 = vector.load %arg4[%c0_8, %c0_9] : memref<4x32xf32, #tpu.memory_space<vmem>>, vector<4x32xf32>
    %cst_10 = arith.constant dense<0.000000e+00> : vector<256x32xf32>
    %29 = tpu.matmul %27, %28, %cst_10 {dimension_numbers = #tpu.dot_dimension_numbers<[1], [0], [0], [1], [0, 0, 1, 1], [], []>} : vector<256x4xf32>, vector<4x32xf32>, vector<256x32xf32> -> vector<256x32xf32>
    %c0_11 = arith.constant 0 : index
    %c0_12 = arith.constant 0 : index
    %30 = vector.load %arg5[%c0_11, %c0_12] : memref<1x32xf32, #tpu.memory_space<vmem>>, vector<1x32xf32>
    %31 = vector.broadcast %30 : vector<1x32xf32> to vector<256x32xf32>
    %32 = arith.addf %29, %31 : vector<256x32xf32>
    %c0_13 = arith.constant 0 : index
    %c0_14 = arith.constant 0 : index
    %c0_15 = arith.constant 0 : index
    %33 = vector.load %arg6[%c0_13, %c0_14, %c0_15] : memref<1x256x32xf32, #tpu.memory_space<vmem>>, vector<1x256x32xf32>
    %34 = vector.shape_cast %33 : vector<1x256x32xf32> to vector<256x32xf32>
    %35 = vector.shape_cast %32 : vector<256x32xf32> to vector<1x256x32xf32>
    tpu.vector_store %arg6[%c0_13, %c0_14, %c0_15], %35 {strides = array<i32>} : memref<1x256x32xf32, #tpu.memory_space<vmem>>, vector<1x256x32xf32>,
    return
  }
  func.func @transform_0(%arg0: i32) -> (i32, i32, i32, i32) {
    %c0_i32 = arith.constant 0 : i32
    %c0_i32_0 = arith.constant 0 : i32
    %c0_i32_1 = arith.constant 0 : i32
    %c0_i32_2 = arith.constant 0 : i32
    return %arg0, %c0_i32, %c0_i32_0, %c0_i32_1 : i32, i32, i32, i32
  }
  func.func @transform_1(%arg0: i32) -> (i32, i32) {
    %c0_i32 = arith.constant 0 : i32
    %c0_i32_0 = arith.constant 0 : i32
    %c0_i32_1 = arith.constant 0 : i32
    return %c0_i32, %c0_i32_0 : i32, i32
  }
  func.func @transform_2(%arg0: i32) -> (i32, i32) {
    %c0_i32 = arith.constant 0 : i32
    %c0_i32_0 = arith.constant 0 : i32
    %c0_i32_1 = arith.constant 0 : i32
    return %c0_i32, %c0_i32_0 : i32, i32
  }
  func.func @transform_3(%arg0: i32) -> (i32, i32) {
    %c0_i32 = arith.constant 0 : i32
    %c0_i32_0 = arith.constant 0 : i32
    %c0_i32_1 = arith.constant 0 : i32
    return %c0_i32, %c0_i32_0 : i32, i32
  }
  func.func @transform_4(%arg0: i32) -> (i32, i32) {
    %c0_i32 = arith.constant 0 : i32
    %c0_i32_0 = arith.constant 0 : i32
    %c0_i32_1 = arith.constant 0 : i32
    return %c0_i32, %c0_i32_0 : i32, i32
  }
  func.func @transform_5(%arg0: i32) -> (i32, i32, i32) {
    %c0_i32 = arith.constant 0 : i32
    %c0_i32_0 = arith.constant 0 : i32
    %c0_i32_1 = arith.constant 0 : i32
    return %arg0, %c0_i32, %c0_i32_0 : i32, i32, i32
  }
}

</mosaic_0001>

<bundles_post_ra>
// kernel: tile.9
= control target key start
LH: loop header
LB: loop body
LE: loop exit
PB: predicated region body
PF: predicated region fallthrough
CT: control target
= control target key end

     0   :  { %s37_s8 = smov 8   ;;  %s38_s9 = smov 16   ;;  %vm7_vm0 = vcmask 64512   ;;  %vm13_vm1 = vcmask 261312   ;;  %vm19_vm2 = vcmask 195712   ;;  %vm25_vm3 = vcmask 130112   ;;  %s55_s0 = inlined_call_operand.vmem [shape: f32[4,8], index: 0, kind: input, shape index: {}]   ;;  %s56_s1 = inlined_call_operand.vmem [shape: f32[1,32], index: 1, kind: output, shape index: {}]  }
   0x1   :  { %v4_v0 = vld [vmem:[%s55_s0] sm:$0xf]  ;;  %s36_s0 = smov 24  }
   0x2   :  { %5 = vst [vmem:[#allocation1] sm:$0xf] %v4_v0 }
   0x9   :  { %v10_v1 = vld [vmem:[#allocation1 + $0x3] sm:$0x1]   ;;  %v22_v2 = vld [vmem:[#allocation1 + $0x1] sm:$0x1]   ;;  %v16_v3 = vld [vmem:[#allocation1 + $0x2] sm:$0x1]  }
   0xa   :  { %11 = vrot.lane.b32.xlu0 %v10_v1, %s36_s0  ;;  %23 = vrot.lane.b32.xlu1 %v22_v2, %s37_s8  ;;  %v6_v4 = vld [vmem:[#allocation1] sm:$0x1]  }
   0xb   :  { %8 = vst.msk [vmem:[#allocation0] sm:$0x1] %vm7_vm0, %v6_v4  }
  0x12   :  { %17 = vrot.lane.b32.xlu0 %v16_v3, %s38_s9 }
  0x7c   :  { %v12_v5 = vpop.permute.xlu0 %11   ;;  %v24_v6 = vpop.permute.xlu1 %23  }
  0x7d   :  { %14 = vst.msk [vmem:[#allocation0] sm:$0x1] %vm13_vm1, %v12_v5  }
  0x84   :  { %v18_v7 = vpop.permute.xlu0 %17  }
  0x85   :  { %20 = vst.msk [vmem:[#allocation0] sm:$0x1] %vm19_vm2, %v18_v7  }
  0x86   :  { %26 = vst.msk [vmem:[#allocation0] sm:$0x1] %vm25_vm3, %v24_v6  }
  0x8d   :  { %v29_v8 = vld [vmem:[#allocation0] sm:$0x1] }
  0x8e   :  { %32 = vst [vmem:[%s56_s1] sm:$0x1] %v29_v8 }

// kernel: tile.8
= control target key start
LH: loop header
LB: loop body
LE: loop exit
PB: predicated region body
PF: predicated region fallthrough
CT: control target
= control target key end

     0   :  { %s22_s0 = inlined_call_operand.vmem [shape: f32[8], index: 0, kind: input, shape index: {}]   ;;  %s23_s1 = inlined_call_operand.vmem [shape: f32[4,8], index: 1, kind: output, shape index: {}]  }
   0x1   :  { %v4_v0 = vld [vmem:[%s22_s0] ss:$0 sm:$0xff] }
   0x2   :  { %5 = vst [vmem:[%s23_s1] sm:$0xf] %v4_v0 }

// kernel: bridge_up_pallas.1
= control target key start
LH: loop header
LB: loop body
LE: loop exit
PB: predicated region body
PF: predicated region fallthrough
CT: control target
= control target key end

     0   :  { %s2287_s18 = smov 0   ;;  %s4207_s0 = inlined_call_operand.vmem [shape: f32[2,18,18,4], index: 0, kind: input, shape index: {}]   ;;  %s4208_s1 = inlined_call_operand.vmem [shape: f32[36,4], index: 1, kind: input, shape index: {}]   ;;  %s4209_s2 = inlined_call_operand.vmem [shape: f32[1,4], index: 2, kind: input, shape index: {}]   ;;  %s4210_s3 = inlined_call_operand.vmem [shape: f32[4,32], index: 3, kind: input, shape index: {}]   ;;  %s4211_s4 = inlined_call_operand.vmem [shape: f32[1,32], index: 4, kind: input, shape index: {}]   ;;  %s4212_s5 = inlined_call_operand.vmem [shape: f32[2,256,32], index: 5, kind: output, shape index: {}]  }
   0x1 LB: > { %s2106_s19 = sadd.s32 4294967295, %s2247_s18   ;;  %p2110_p0 = scmp.ge.s32.totalorder %s2247_s18, 1  ;;  %s2247_s18 = sphi %s2287_s18, %s15_s18  }
   0x2   : > { %p187_p1 = scmp.lt.s32.totalorder %s2247_s18, 3 }
   0x4   : > { %p188_p2 = pnand %p2110_p0, %p187_p1 }
   0x6   : > { %191 = sbr.rel (%p188_p2) target bundleno = 1085 (0x43d), region = 40 }
   0xb   : > { %p215_p3 = scmp.lt.s32.totalorder %s2106_s19, 1  ;;  %vm327_vm0 = vcmask 1046528   ;;  %s2249_s24 = smov 4   ;;  %vm408_vm1 = vcmask 1045504   ;;  %vm1653_vm2 = vcmask 1043456   ;;  %vm1283_vm3 = vcmask 31744  }
   0xc   : > { %s2250_s25 = smov 8   ;;  %s2251_s26 = smov 12   ;;  %vm1316_vm4 = vcmask 64512   ;;  %vm1349_vm5 = vcmask 97280   ;;  %vm1382_vm6 = vcmask 130048   ;;  %vm1415_vm7 = vcmask 162816  }
   0xd   : > { %s4539_s19 = smov (!%p215_p3, %s2106_s19), 1  ;;  %s2252_s27 = smov 16   ;;  %vm1448_vm8 = vcmask 195584   ;;  %vm1481_vm9 = vcmask 228352   ;;  %vm1514_vm10 = vcmask 261120   ;;  %vm1556_vm11 = vcmask 293888  }
   0xe   : > { %s2189_s20 = smul.u32 432, %s4539_s19  ;;  %s2253_s28 = smov 20  }
   0xf   : > { %s2254_s29 = smov 32   ;;  %s2255_s30 = smov 28  }
  0x10   : > { %s2301_s23 = scalar_lea.vmem %s4207_s0, %s2189_s20  ;;  %s2256_s6 = smov 24  }
  0x11   : > { %v2304_v0 = vld [vmem:[%s2301_s23 + $0x30] sm:$0xff]  ;;  %v2307_v1 = vld [vmem:[%s2301_s23 + $0x38] sm:$0xff]  ;;  %v2315_v5 = vld [vmem:[%s2301_s23 + $0x20] sm:$0xff] }
  0x12   : > { %v2310_v2 = vld [vmem:[%s2301_s23 + $0x18] sm:$0xff]  ;;  %v338_v3 = vrot.slane %v2304_v0, 1  ;;  %v339_v4 = vrot.slane %v2307_v1, 1  ;;  %v2319_v7 = vld [vmem:[%s2301_s23] sm:$0xff]  ;;  %v2322_v8 = vld [vmem:[%s2301_s23 + $0x8] sm:$0xff]  ;;  %v334_v9 = vrot.slane %v2315_v5, 1 }
  0x13   : > { %v333_v6 = vrot.slane %v2310_v2, 1  ;;  %v328_v10 = vrot.slane %v2319_v7, 1  ;;  %v329_v11 = vrot.slane %v2322_v8, 1  ;;  %v2328_v12 = vld [vmem:[%s2301_s23 + $0x40] sm:$0x3]  ;;  %v2362_v25 = vld [vmem:[%s2301_s23 + $0x68] sm:$0xff] }
  0x14   : > { %v2331_v13 = vsel %vm327_vm0, %v338_v3, %v339_v4  ;;  %v2334_v14 = vld [vmem:[%s2301_s23 + $0x28] sm:$0x3]  ;;  %v2337_v15 = vld [vmem:[%s2301_s23 + $0x10] sm:$0x3]  ;;  %v341_v18 = vrot.slane %v2328_v12, 1  ;;  %v2359_v24 = vld [vmem:[%s2301_s23 + $0x60] sm:$0xff] }
  0x15   : > { %523 = vrot.lane.b32.xlu2 %v2331_v13, %s2249_s24  ;;  %v2342_v16 = vsel %vm327_vm0, %v333_v6, %v334_v9  ;;  %v330_v17 = vsel %vm327_vm0, %v328_v10, %v329_v11  ;;  %v336_v19 = vrot.slane %v2334_v14, 1  ;;  %v331_v20 = vrot.slane %v2337_v15, 1  ;;  %v2365_v26 = vld [vmem:[%s2301_s23 + $0x50] sm:$0xff]  ;;  %v2368_v27 = vld [vmem:[%s2301_s23 + $0x58] sm:$0x3]  ;;  %v2371_v28 = vld [vmem:[%s2301_s23 + $0x48] sm:$0xff] }
  0x16   : > { %519 = vrot.lane.b32.xlu1 %v2342_v16, %s2249_s24  ;;  %515 = vrot.lane.b32.xlu0 %v330_v17, %s2249_s24  ;;  %v2352_v21 = vsel %vm327_vm0, %v339_v4, %v341_v18  ;;  %v348_v29 = vrot.slane %v2359_v24, 1  ;;  %v349_v30 = vrot.slane %v2362_v25, 1  ;;  %v344_v31 = vrot.slane %v2365_v26, 1  ;;  %v2393_v37 = vld [vmem:[%s2301_s23 + $0x80] sm:$0xff]  ;;  %v2396_v38 = vld [vmem:[%s2301_s23 + $0x88] sm:$0x3] }
  0x17   : > { %v2355_v22 = vsel %vm327_vm0, %v334_v9, %v336_v19  ;;  %v332_v23 = vsel %vm327_vm0, %v329_v11, %v331_v20  ;;  %v346_v32 = vrot.slane %v2368_v27, 1  ;;  %v343_v33 = vrot.slane %v2371_v28, 1  ;;  %v2399_v39 = vld [vmem:[%s2301_s23 + $0x78] sm:$0xff]  ;;  %v2402_v40 = vld [vmem:[%s2301_s23 + $0x70] sm:$0x3]  ;;  %v2424_v48 = vld [vmem:[%s2301_s23 + $0xa8] sm:$0xff] }
  0x18   : > { %v2384_v34 = vsel %vm327_vm0, %v348_v29, %v349_v30  ;;  %v354_v41 = vrot.slane %v2393_v37, 1  ;;  %v356_v42 = vrot.slane %v2396_v38, 1  ;;  %v353_v43 = vrot.slane %v2399_v39, 1  ;;  %v2427_v49 = vld [vmem:[%s2301_s23 + $0xb0] sm:$0xff]  ;;  %v2430_v50 = vld [vmem:[%s2301_s23 + $0x98] sm:$0xff]  ;;  %v2459_v61 = vld [vmem:[%s2301_s23 + $0xc8] sm:$0xff] }
  0x19   : > { %4293 = vst [vmem:[#allocation2_spill] sm:$0xff] %v2384_v34  ;;  %v2387_v35 = vsel %vm327_vm0, %v344_v31, %v346_v32  ;;  %v2390_v36 = vsel %vm327_vm0, %v343_v33, %v344_v31  ;;  %v351_v44 = vrot.slane %v2402_v40, 1  ;;  %v2433_v51 = vld [vmem:[%s2301_s23 + $0xa0] sm:$0x3]  ;;  %v2436_v52 = vld [vmem:[%s2301_s23 + $0x90] sm:$0xff]  ;;  %v363_v53 = vrot.slane %v2424_v48, 1 }
  0x1a   : > { %v2415_v45 = vsel %vm327_vm0, %v354_v41, %v356_v42  ;;  %v2418_v46 = vsel %vm327_vm0, %v353_v43, %v354_v41  ;;  %v364_v54 = vrot.slane %v2427_v49, 1  ;;  %v359_v55 = vrot.slane %v2430_v50, 1  ;;  %v2462_v62 = vld [vmem:[%s2301_s23 + $0xd0] sm:$0x3]  ;;  %v2465_v63 = vld [vmem:[%s2301_s23 + $0xc0] sm:$0xff]  ;;  %v2493_v20 = vld [vmem:[%s2301_s23 + $0xf8] sm:$0xff] }
  0x1b   : > { %4294 = vst [vmem:[#allocation3_spill] sm:$0xff] %v2415_v45  ;;  %v2421_v47 = vsel %vm327_vm0, %v349_v30, %v351_v44  ;;  %v361_v56 = vrot.slane %v2433_v51, 1  ;;  %v358_v57 = vrot.slane %v2436_v52, 1  ;;  %v2468_v3 = vld [vmem:[%s2301_s23 + $0xb8] sm:$0x3]  ;;  %v369_v4 = vrot.slane %v2459_v61, 1 }
  0x1c   : > { %4295 = vst [vmem:[#allocation4_spill] sm:$0xff] %v2421_v47  ;;  %v2450_v58 = vsel %vm327_vm0, %v363_v53, %v364_v54  ;;  %v371_v6 = vrot.slane %v2462_v62, 1  ;;  %v368_v9 = vrot.slane %v2465_v63, 1  ;;  %v366_v10 = vrot.slane %v2468_v3, 1  ;;  %v2490_v19 = vld [vmem:[%s2301_s23 + $0xf0] sm:$0xff]  ;;  %v2502_v30 = vld [vmem:[%s2301_s23 + $0xd8] sm:$0xff] }
  0x1d   : > { %525 = vrot.lane.b32.xlu2 %v2352_v21, %s2249_s24  ;;  %4296 = vst [vmem:[#allocation5_spill] sm:$0xff] %v2450_v58  ;;  %v2453_v59 = vsel %vm327_vm0, %v359_v55, %v361_v56  ;;  %v2456_v60 = vsel %vm327_vm0, %v358_v57, %v359_v55  ;;  %v2499_v29 = vld [vmem:[%s2301_s23 + $0xe8] sm:$0x3]  ;;  %v378_v31 = vrot.slane %v2490_v19, 1  ;;  %v379_v32 = vrot.slane %v2493_v20, 1 }
  0x1e   : > { %521 = vrot.lane.b32.xlu1 %v2355_v22, %s2249_s24  ;;  %517 = vrot.lane.b32.xlu0 %v332_v23, %s2249_s24  ;;  %4297 = vst [vmem:[#allocation6_spill] sm:$0xff] %v2453_v59  ;;  %v2481_v11 = vsel %vm327_vm0, %v369_v4, %v371_v6  ;;  %v2484_v17 = vsel %vm327_vm0, %v368_v9, %v369_v4  ;;  %v2496_v23 = vld [vmem:[%s2301_s23 + $0xe0] sm:$0xff]  ;;  %v376_v41 = vrot.slane %v2499_v29, 1  ;;  %v373_v42 = vrot.slane %v2502_v30, 1  ;;  %v2528_v55 = vld [vmem:[%s2301_s23 + $0x118] sm:$0x3] }
  0x1f   : > { %4298 = vst [vmem:[#allocation7_spill] sm:$0xff] %v2456_v60  ;;  %v2487_v18 = vsel %vm327_vm0, %v364_v54, %v366_v10  ;;  %v374_v33 = vrot.slane %v2496_v23, 1  ;;  %v2516_v43 = vsel %vm327_vm0, %v378_v31, %v379_v32  ;;  %v2525_v54 = vld [vmem:[%s2301_s23 + $0x110] sm:$0xff]  ;;  %v2531_v56 = vld [vmem:[%s2301_s23 + $0x108] sm:$0xff]  ;;  %v2534_v57 = vld [vmem:[%s2301_s23 + $0x100] sm:$0x3] }
  0x20   : > { %4299 = vst [vmem:[#allocation8_spill] sm:$0xff] %v2481_v11  ;;  %v384_v4 = vrot.slane %v2525_v54, 1  ;;  %v386_v6 = vrot.slane %v2528_v55, 1  ;;  %v383_v9 = vrot.slane %v2531_v56, 1  ;;  %v381_v10 = vrot.slane %v2534_v57, 1 }
  0x21   : > { %4300 = vst [vmem:[#allocation9_spill] sm:$0xff] %v2484_v17  ;;  %v2519_v44 = vsel %vm327_vm0, %v374_v33, %v376_v41  ;;  %v2522_v53 = vsel %vm327_vm0, %v373_v42, %v374_v33  ;;  %v2556_v42 = vld [vmem:[%s2301_s23 + $0x138] sm:$0xff] }
  0x22   : > { %4301 = vst [vmem:[#allocation10_spill] sm:$0xff] %v2487_v18  ;;  %v2547_v31 = vsel %vm327_vm0, %v384_v4, %v386_v6  ;;  %v2550_v33 = vsel %vm327_vm0, %v383_v9, %v384_v4  ;;  %v2553_v41 = vsel %vm327_vm0, %v379_v32, %v381_v10  ;;  %v2568_v6 = vld [vmem:[%s2301_s23 + $0x120] sm:$0xff]  ;;  %v393_v32 = vrot.slane %v2556_v42, 1 }
  0x23   : > { %4302 = vst [vmem:[#allocation11_spill] sm:$0xff] %v2516_v43 }
  0x24   : > { %4303 = vst [vmem:[#allocation12_spill] sm:$0xff] %v2519_v44 }
  0x25   : > { %531 = vrot.lane.b32.xlu2 %v2384_v34, %s2249_s24  ;;  %4304 = vst [vmem:[#allocation13_spill] sm:$0xff] %v2522_v53  ;;  %v2628_v34 = vld [vmem:[%s2301_s23 + $0x168] sm:$0xff] }
  0x26   : > { %529 = vrot.lane.b32.xlu1 %v2387_v35, %s2249_s24  ;;  %527 = vrot.lane.b32.xlu0 %v2390_v36, %s2249_s24  ;;  %4305 = vst [vmem:[#allocation14_spill] sm:$0xff] %v2547_v31 }
  0x27   : > { %4306 = vst [vmem:[#allocation15_spill] sm:$0xff] %v2550_v33 }
  0x28   : > { %4307 = vst [vmem:[#allocation16_spill] sm:$0xff] %v2553_v41 }
  0x2d   : > { %537 = vrot.lane.b32.xlu2 %v2415_v45, %s2249_s24  ;;  %v2600_v45 = vld [vmem:[%s2301_s23 + $0x148] sm:$0x3] }
  0x2e   : > { %535 = vrot.lane.b32.xlu1 %v2418_v46, %s2249_s24  ;;  %533 = vrot.lane.b32.xlu0 %v2421_v47, %s2249_s24 }
  0x35   : > { %543 = vrot.lane.b32.xlu2 %v2450_v58, %s2249_s24 }
  0x36   : > { %541 = vrot.lane.b32.xlu1 %v2453_v59, %s2249_s24  ;;  %539 = vrot.lane.b32.xlu0 %v2456_v60, %s2249_s24 }
  0x3d   : > { %549 = vrot.lane.b32.xlu2 %v2481_v11, %s2249_s24  ;;  %v2565_v11 = vld [vmem:[%s2301_s23 + $0x130] sm:$0x3] }
  0x3e   : > { %547 = vrot.lane.b32.xlu1 %v2484_v17, %s2249_s24  ;;  %545 = vrot.lane.b32.xlu0 %v2487_v18, %s2249_s24  ;;  %v391_v10 = vrot.slane %v2565_v11, 1  ;;  %v2594_v18 = vld [vmem:[%s2301_s23 + $0x160] sm:$0x3]  ;;  %v2597_v17 = vld [vmem:[%s2301_s23 + $0x150] sm:$0xff] }
  0x45   : > { %555 = vrot.lane.b32.xlu2 %v2516_v43, %s2249_s24  ;;  %v2562_v43 = vld [vmem:[%s2301_s23 + $0x128] sm:$0xff] }
  0x46   : > { %553 = vrot.lane.b32.xlu1 %v2519_v44, %s2249_s24  ;;  %551 = vrot.lane.b32.xlu0 %v2522_v53, %s2249_s24  ;;  %v2559_v44 = vld [vmem:[%s2301_s23 + $0x140] sm:$0xff]  ;;  %v389_v9 = vrot.slane %v2562_v43, 1  ;;  %v388_v53 = vrot.slane %v2568_v6, 1 }
  0x47   : > { %v394_v4 = vrot.slane %v2559_v44, 1 }
  0x49   : > { %v2582_v58 = vsel %vm327_vm0, %v393_v32, %v394_v4  ;;  %v401_v32 = vrot.slane %v2594_v18, 1 }
  0x4a   : > { %4308 = vst [vmem:[#allocation17_spill] sm:$0xff] %v2582_v58 }
  0x4d   : > { %561 = vrot.lane.b32.xlu2 %v2547_v31, %s2249_s24  ;;  %v2585_v31 = vsel %vm327_vm0, %v389_v9, %v391_v10  ;;  %v396_v10 = vrot.slane %v2600_v45, 1 }
  0x4e   : > { %559 = vrot.lane.b32.xlu1 %v2550_v33, %s2249_s24  ;;  %557 = vrot.lane.b32.xlu0 %v2553_v41, %s2249_s24  ;;  %4309 = vst [vmem:[#allocation18_spill] sm:$0xff] %v2585_v31  ;;  %v2588_v33 = vsel %vm327_vm0, %v388_v53, %v389_v9  ;;  %v2591_v41 = vld [vmem:[%s2301_s23 + $0x158] sm:$0xff]  ;;  %v398_v9 = vrot.slane %v2597_v17, 1 }
  0x4f   : > { %4310 = vst [vmem:[#allocation19_spill] sm:$0xff] %v2588_v33  ;;  %v399_v53 = vrot.slane %v2591_v41, 1 }
  0x51   : > { %v2613_v60 = vsel %vm327_vm0, %v399_v53, %v401_v32  ;;  %v2616_v59 = vsel %vm327_vm0, %v398_v9, %v399_v53  ;;  %v409_v53 = vrot.slane %v2319_v7, 2  ;;  %v415_v7 = vrot.slane %v2315_v5, 2 }
  0x52   : > { %4311 = vst [vmem:[#allocation20_spill] sm:$0xff] %v2613_v60 }
  0x53   : > { %4312 = vst [vmem:[#allocation21_spill] sm:$0xff] %v2616_v59 }
  0x55   : > { %567 = vrot.lane.b32.xlu2 %v2582_v58, %s2249_s24  ;;  %v2619_v58 = vsel %vm327_vm0, %v394_v4, %v396_v10  ;;  %v410_v4 = vrot.slane %v2322_v8, 2  ;;  %v403_v10 = vrot.slane %v2628_v34, 1  ;;  %v417_v8 = vrot.slane %v2334_v14, 2 }
  0x56   : > { %565 = vrot.lane.b32.xlu1 %v2585_v31, %s2249_s24  ;;  %563 = vrot.lane.b32.xlu0 %v2588_v33, %s2249_s24  ;;  %4313 = vst [vmem:[#allocation22_spill] sm:$0xff] %v2619_v58  ;;  %v2622_v31 = vld [vmem:[%s2301_s23 + $0x170] sm:$0xff]  ;;  %v2625_v33 = vld [vmem:[%s2301_s23 + $0x178] sm:$0x3]  ;;  %v424_v14 = vrot.slane %v2371_v28, 2 }
  0x57   : > { %v404_v32 = vrot.slane %v2622_v31, 1  ;;  %v406_v9 = vrot.slane %v2625_v33, 1  ;;  %v411_v47 = vsel %vm408_vm1, %v409_v53, %v410_v4  ;;  %v414_v53 = vrot.slane %v2310_v2, 2 }
  0x5d   : > { %573 = vrot.lane.b32.xlu2 %v2613_v60, %s2249_s24  ;;  %v2643_v60 = vsel %vm327_vm0, %v404_v32, %v406_v9  ;;  %v412_v9 = vrot.slane %v2337_v15, 2  ;;  %v425_v15 = vrot.slane %v2365_v26, 2 }
  0x5e   : > { %571 = vrot.lane.b32.xlu1 %v2616_v59, %s2249_s24  ;;  %569 = vrot.lane.b32.xlu0 %v2619_v58, %s2249_s24  ;;  %4314 = vst [vmem:[#allocation23_spill] sm:$0xff] %v2643_v60  ;;  %v2646_v59 = vsel %vm327_vm0, %v403_v10, %v404_v32  ;;  %v2658_v32 = vsel %vm408_vm1, %v415_v7, %v417_v8  ;;  %v420_v8 = vrot.slane %v2307_v1, 2 }
  0x5f   : > { %4315 = vst [vmem:[#allocation24_spill] sm:$0xff] %v2646_v59  ;;  %v2661_v10 = vsel %vm408_vm1, %v414_v53, %v415_v7  ;;  %v422_v7 = vrot.slane %v2328_v12, 2  ;;  %v2677_v53 = vsel %vm408_vm1, %v424_v14, %v425_v15  ;;  %v430_v12 = vrot.slane %v2362_v25, 2 }
  0x60   : > { %v432_v14 = vrot.slane %v2402_v40, 2  ;;  %v440_v40 = vrot.slane %v2430_v50, 2 }
  0x65   : > { %611 = vrot.lane.b32.xlu2 %v411_v47, %s2250_s25  ;;  %v413_v47 = vsel %vm408_vm1, %v410_v4, %v412_v9  ;;  %v419_v4 = vrot.slane %v2304_v0, 2  ;;  %v2680_v9 = vsel %vm408_vm1, %v420_v8, %v422_v7  ;;  %v429_v7 = vrot.slane %v2359_v24, 2 }
  0x66   : > { %577 = vrot.lane.b32.xlu1 %v2643_v60, %s2249_s24  ;;  %575 = vrot.lane.b32.xlu0 %v2646_v59, %s2249_s24  ;;  %s2182_s24 = sshll.u32 %s4539_s19, 8 }
  0x67   : > { %s3949_s19 = scalar_lea.vmem %s4212_s5, %s2182_s24 }
  0x6d   : > { %617 = vrot.lane.b32.xlu2 %v2658_v32, %s2250_s25 }
  0x6e   : > { %615 = vrot.lane.b32.xlu1 %v2661_v10, %s2250_s25  ;;  %613 = vrot.lane.b32.xlu0 %v413_v47, %s2250_s25  ;;  %v2683_v47 = vsel %vm408_vm1, %v419_v4, %v420_v8  ;;  %v427_v8 = vrot.slane %v2368_v27, 2  ;;  %v2698_v4 = vsel %vm408_vm1, %v430_v12, %v432_v14  ;;  %v439_v27 = vrot.slane %v2436_v52, 2 }
  0x6f   : > { %v2671_v60 = vpop.permute.xlu2 %523  ;;  %4318 = vst [vmem:[#allocation27_spill] sm:$0xff] %v2698_v4 }
  0x70   : > { %4316 = vst [vmem:[#allocation25_spill] sm:$0xff] %v2671_v60  ;;  %v2701_v60 = vsel %vm408_vm1, %v429_v7, %v430_v12  ;;  %v2704_v58 = vsel %vm408_vm1, %v425_v15, %v427_v8  ;;  %v435_v12 = vrot.slane %v2393_v37, 2  ;;  %v437_v15 = vrot.slane %v2396_v38, 2 }
  0x71   : > { %4319 = vst [vmem:[#allocation28_spill] sm:$0xff] %v2701_v60  ;;  %v434_v7 = vrot.slane %v2399_v39, 2  ;;  %v2720_v8 = vsel %vm408_vm1, %v439_v27, %v440_v40  ;;  %v445_v38 = vrot.slane %v2427_v49, 2  ;;  %v447_v27 = vrot.slane %v2468_v3, 2 }
  0x72   : > { %4321 = vst [vmem:[#allocation30_spill] sm:$0xff] %v2720_v8  ;;  %v455_v3 = vrot.slane %v2496_v23, 2 }
  0x75   : > { %623 = vrot.lane.b32.xlu2 %v2677_v53, %s2250_s25 }
  0x76   : > { %621 = vrot.lane.b32.xlu1 %v2680_v9, %s2250_s25  ;;  %619 = vrot.lane.b32.xlu0 %v2683_v47, %s2250_s25 }
  0x77   : > { %v2693_v59 = vpop.permute.xlu2 %525 }
  0x78   : > { %4317 = vst [vmem:[#allocation26_spill] sm:$0xff] %v2693_v59  ;;  %v2723_v59 = vsel %vm408_vm1, %v435_v12, %v437_v15  ;;  %v444_v15 = vrot.slane %v2424_v48, 2 }
  0x79   : > { %4322 = vst [vmem:[#allocation31_spill] sm:$0xff] %v2723_v59 }
  0x7d   : > { %629 = vrot.lane.b32.xlu2 %v2698_v4, %s2250_s25  ;;  %v2726_v4 = vsel %vm408_vm1, %v434_v7, %v435_v12  ;;  %v442_v12 = vrot.slane %v2433_v51, 2  ;;  %v454_v51 = vrot.slane %v2502_v30, 2 }
  0x7e   : > { %627 = vrot.lane.b32.xlu1 %v2701_v60, %s2250_s25  ;;  %625 = vrot.lane.b32.xlu0 %v2704_v58, %s2250_s25  ;;  %4323 = vst [vmem:[#allocation32_spill] sm:$0xff] %v2726_v4 }
  0x7f   : > { %v2714_v14 = vpop.permute.xlu2 %531 }
  0x80   : > { %4320 = vst [vmem:[#allocation29_spill] sm:$0xff] %v2714_v14 }
  0x85   : > { %635 = vrot.lane.b32.xlu2 %v2720_v8, %s2250_s25  ;;  %v2745_v8 = vsel %vm408_vm1, %v445_v38, %v447_v27 }
  0x86   : > { %633 = vrot.lane.b32.xlu1 %v2723_v59, %s2250_s25  ;;  %631 = vrot.lane.b32.xlu0 %v2726_v4, %s2250_s25  ;;  %4327 = vst [vmem:[#allocation36_spill] sm:$0xff] %v2745_v8  ;;  %v2748_v59 = vsel %vm408_vm1, %v444_v15, %v445_v38  ;;  %v2751_v4 = vsel %vm408_vm1, %v440_v40, %v442_v12  ;;  %v450_v38 = vrot.slane %v2459_v61, 2  ;;  %v452_v40 = vrot.slane %v2462_v62, 2 }
  0x87   : > { %v2736_v14 = vpop.permute.xlu2 %537  ;;  %4328 = vst [vmem:[#allocation37_spill] sm:$0xff] %v2748_v59  ;;  %v449_v15 = vrot.slane %v2465_v63, 2  ;;  %v460_v62 = vrot.slane %v2493_v20, 2 }
  0x88   : > { %4324 = vst [vmem:[#allocation33_spill] sm:$0xff] %v2736_v14  ;;  %v2740_v7 = vpop.permute.xlu1 %519  ;;  %v2742_v60 = vpop.permute.xlu0 %515 }
  0x89   : > { %4325 = vst [vmem:[#allocation34_spill] sm:$0xff] %v2740_v7 }
  0x8a   : > { %4326 = vst [vmem:[#allocation35_spill] sm:$0xff] %v2742_v60 }
  0x8b   : > { %4329 = vst [vmem:[#allocation38_spill] sm:$0xff] %v2751_v4 }
  0x8d   : > { %641 = vrot.lane.b32.xlu2 %v2745_v8, %s2250_s25  ;;  %v2771_v8 = vsel %vm408_vm1, %v454_v51, %v455_v3  ;;  %v462_v51 = vrot.slane %v2534_v57, 2  ;;  %v470_v57 = vrot.slane %v2562_v43, 2 }
  0x8e   : > { %639 = vrot.lane.b32.xlu1 %v2748_v59, %s2250_s25  ;;  %637 = vrot.lane.b32.xlu0 %v2751_v4, %s2250_s25  ;;  %4333 = vst [vmem:[#allocation42_spill] sm:$0xff] %v2771_v8  ;;  %v2774_v59 = vsel %vm408_vm1, %v450_v38, %v452_v40  ;;  %v2777_v4 = vsel %vm408_vm1, %v449_v15, %v450_v38  ;;  %v459_v40 = vrot.slane %v2490_v19, 2  ;;  %v457_v38 = vrot.slane %v2499_v29, 2 }
  0x8f   : > { %v2761_v27 = vpop.permute.xlu2 %543  ;;  %4334 = vst [vmem:[#allocation43_spill] sm:$0xff] %v2774_v59  ;;  %v2796_v7 = vsel %vm408_vm1, %v460_v62, %v462_v51  ;;  %v469_v29 = vrot.slane %v2568_v6, 2 }
  0x90   : > { %4330 = vst [vmem:[#allocation39_spill] sm:$0xff] %v2761_v27  ;;  %v2766_v12 = vpop.permute.xlu1 %521  ;;  %v2768_v14 = vpop.permute.xlu0 %517 }
  0x91   : > { %4331 = vst [vmem:[#allocation40_spill] sm:$0xff] %v2766_v12 }
  0x92   : > { %4332 = vst [vmem:[#allocation41_spill] sm:$0xff] %v2768_v14 }
  0x93   : > { %4335 = vst [vmem:[#allocation44_spill] sm:$0xff] %v2777_v4 }
  0x95   : > { %647 = vrot.lane.b32.xlu2 %v2771_v8, %s2250_s25 }
  0x96   : > { %645 = vrot.lane.b32.xlu1 %v2774_v59, %s2250_s25  ;;  %643 = vrot.lane.b32.xlu0 %v2777_v4, %s2250_s25  ;;  %v2799_v59 = vsel %vm408_vm1, %v459_v40, %v460_v62  ;;  %v2802_v4 = vsel %vm408_vm1, %v455_v3, %v457_v38  ;;  %v465_v62 = vrot.slane %v2525_v54, 2  ;;  %v467_v3 = vrot.slane %v2528_v55, 2 }
  0x97   : > { %v2787_v27 = vpop.permute.xlu2 %549  ;;  %4339 = vst [vmem:[#allocation48_spill] sm:$0xff] %v2802_v4  ;;  %v464_v40 = vrot.slane %v2531_v56, 2  ;;  %v475_v55 = vrot.slane %v2559_v44, 2 }
  0x98   : > { %4336 = vst [vmem:[#allocation45_spill] sm:$0xff] %v2787_v27  ;;  %v2791_v15 = vpop.permute.xlu1 %529  ;;  %v2793_v12 = vpop.permute.xlu0 %527  ;;  %v2825_v14 = vsel %vm408_vm1, %v465_v62, %v467_v3  ;;  %v474_v3 = vrot.slane %v2556_v42, 2 }
  0x99   : > { %4337 = vst [vmem:[#allocation46_spill] sm:$0xff] %v2791_v15  ;;  %v2828_v27 = vsel %vm408_vm1, %v464_v40, %v465_v62  ;;  %v472_v62 = vrot.slane %v2565_v11, 2  ;;  %v485_v11 = vrot.slane %v2622_v31, 2 }
  0x9a   : > { %4338 = vst [vmem:[#allocation47_spill] sm:$0xff] %v2793_v12  ;;  %v2822_v12 = vsel %vm408_vm1, %v469_v29, %v470_v57  ;;  %v477_v29 = vrot.slane %v2600_v45, 2  ;;  %v2850_v60 = vsel %vm408_vm1, %v474_v3, %v475_v55  ;;  %v484_v45 = vrot.slane %v2628_v34, 2 }
  0x9b   : > { %4343 = vst [vmem:[#allocation52_spill] sm:$0xff] %v2822_v12  ;;  %v479_v3 = vrot.slane %v2597_v17, 2 }
  0x9d   : > { %653 = vrot.lane.b32.xlu2 %v2796_v7, %s2250_s25 }
  0x9e   : > { %651 = vrot.lane.b32.xlu1 %v2799_v59, %s2250_s25  ;;  %649 = vrot.lane.b32.xlu0 %v2802_v4, %s2250_s25 }
  0x9f   : > { %v2812_v51 = vpop.permute.xlu2 %555 }
  0xa0   : > { %4340 = vst [vmem:[#allocation49_spill] sm:$0xff] %v2812_v51  ;;  %v2817_v38 = vpop.permute.xlu1 %535  ;;  %v2819_v15 = vpop.permute.xlu0 %533  ;;  %v2847_v51 = vsel %vm408_vm1, %v475_v55, %v477_v29  ;;  %v480_v55 = vrot.slane %v2591_v41, 2 }
  0xa1   : > { %4341 = vst [vmem:[#allocation50_spill] sm:$0xff] %v2817_v38 }
  0xa2   : > { %4342 = vst [vmem:[#allocation51_spill] sm:$0xff] %v2819_v15 }
  0xa3   : > { %4347 = vst [vmem:[#allocation56_spill] sm:$0xff] %v2847_v51 }
  0xa5   : > { %659 = vrot.lane.b32.xlu2 %v2822_v12, %s2250_s25  ;;  %v2853_v12 = vsel %vm408_vm1, %v470_v57, %v472_v62  ;;  %v482_v57 = vrot.slane %v2594_v18, 2 }
  0xa6   : > { %657 = vrot.lane.b32.xlu1 %v2825_v14, %s2250_s25  ;;  %655 = vrot.lane.b32.xlu0 %v2828_v27, %s2250_s25 }
  0xa7   : > { %v2838_v38 = vpop.permute.xlu2 %561 }
  0xa8   : > { %4344 = vst [vmem:[#allocation53_spill] sm:$0xff] %v2838_v38  ;;  %v2842_v40 = vpop.permute.xlu1 %541  ;;  %v2844_v15 = vpop.permute.xlu0 %539  ;;  %v2876_v38 = vsel %vm408_vm1, %v480_v55, %v482_v57 }
  0xa9   : > { %4345 = vst [vmem:[#allocation54_spill] sm:$0xff] %v2842_v40 }
  0xaa   : > { %4346 = vst [vmem:[#allocation55_spill] sm:$0xff] %v2844_v15  ;;  %v2873_v15 = vsel %vm408_vm1, %v484_v45, %v485_v11  ;;  %v487_v45 = vrot.slane %v2625_v33, 2 }
  0xab   : > { %4350 = vst [vmem:[#allocation59_spill] sm:$0xff] %v2873_v15 }
  0xad   : > { %665 = vrot.lane.b32.xlu2 %v2847_v51, %s2250_s25  ;;  %v2879_v51 = vsel %vm408_vm1, %v479_v3, %v480_v55  ;;  %v2895_v55 = vsel %vm408_vm1, %v485_v11, %v487_v45 }
  0xae   : > { %663 = vrot.lane.b32.xlu1 %v2850_v60, %s2250_s25  ;;  %661 = vrot.lane.b32.xlu0 %v2853_v12, %s2250_s25  ;;  %4352 = vst [vmem:[#allocation61_spill] sm:$0xff] %v2895_v55 }
  0xaf   : > { %v2863_v29 = vpop.permute.xlu2 %567 }
  0xb0   : > { %4348 = vst [vmem:[#allocation57_spill] sm:$0xff] %v2863_v29  ;;  %v2868_v62 = vpop.permute.xlu1 %547  ;;  %v2870_v40 = vpop.permute.xlu0 %545 }
  0xb1   : > { %4349 = vst [vmem:[#allocation58_spill] sm:$0xff] %v2870_v40 }
  0xb5   : > { %671 = vrot.lane.b32.xlu2 %v2873_v15, %s2250_s25 }
  0xb6   : > { %669 = vrot.lane.b32.xlu1 %v2876_v38, %s2250_s25  ;;  %667 = vrot.lane.b32.xlu0 %v2879_v51, %s2250_s25 }
  0xb7   : > { %v2887_v18 = vpop.permute.xlu2 %573 }
  0xb8   : > { %4351 = vst [vmem:[#allocation60_spill] sm:$0xff] %v2887_v18  ;;  %v2890_v40 = vpop.permute.xlu1 %553  ;;  %v2892_v57 = vpop.permute.xlu0 %551 }
  0xbd   : > { %709 = vrot.lane.b32.xlu2 %v2315_v5, %s2251_s26 }
  0xbe   : > { %707 = vrot.lane.b32.xlu1 %v2310_v2, %s2251_s26  ;;  %673 = vrot.lane.b32.xlu0 %v2895_v55, %s2250_s25 }
  0xbf   : > { %v2903_v3 = vpop.permute.xlu2 %611 }
  0xc0   : > { %v2905_v33 = vpop.permute.xlu1 %559  ;;  %v2907_v18 = vpop.permute.xlu0 %557 }
  0xc1   : > { %4353 = vst [vmem:[#allocation62_spill] sm:$0xff] %v2905_v33 }
  0xc2   : > { %4354 = vst [vmem:[#allocation63_spill] sm:$0xff] %v2907_v18 }
  0xc5   : > { %715 = vrot.lane.b32.xlu2 %v2371_v28, %s2251_s26 }
  0xc6   : > { %713 = vrot.lane.b32.xlu1 %v2307_v1, %s2251_s26  ;;  %711 = vrot.lane.b32.xlu0 %v2304_v0, %s2251_s26 }
  0xc7   : > { %v2915_v5 = vpop.permute.xlu2 %617 }
  0xc8   : > { %v2917_v2 = vpop.permute.xlu1 %565  ;;  %v2919_v11 = vpop.permute.xlu0 %563 }
  0xc9   : > { %4355 = vst [vmem:[#allocation64_spill] sm:$0xff] %v2917_v2 }
  0xca   : > { %4356 = vst [vmem:[#allocation65_spill] sm:$0xff] %v2919_v11 }
  0xcd   : > { %721 = vrot.lane.b32.xlu2 %v2362_v25, %s2251_s26 }
  0xce   : > { %719 = vrot.lane.b32.xlu1 %v2359_v24, %s2251_s26  ;;  %717 = vrot.lane.b32.xlu0 %v2365_v26, %s2251_s26 }
  0xcf   : > { %v2927_v45 = vpop.permute.xlu2 %623 }
  0xd0   : > { %4357 = vst [vmem:[#allocation66_spill] sm:$0xff] %v2927_v45  ;;  %v2929_v29 = vpop.permute.xlu1 %571  ;;  %v2931_v55 = vpop.permute.xlu0 %569 }
  0xd1   : > { %4358 = vst [vmem:[#allocation67_spill] sm:$0xff] %v2929_v29 }
  0xd2   : > { %4359 = vst [vmem:[#allocation68_spill] sm:$0xff] %v2931_v55 }
  0xd5   : > { %727 = vrot.lane.b32.xlu2 %v2436_v52, %s2251_s26 }
  0xd6   : > { %725 = vrot.lane.b32.xlu1 %v2393_v37, %s2251_s26  ;;  %723 = vrot.lane.b32.xlu0 %v2399_v39, %s2251_s26 }
  0xd7   : > { %v2939_v25 = vpop.permute.xlu2 %629 }
  0xd8   : > { %4360 = vst [vmem:[#allocation69_spill] sm:$0xff] %v2939_v25  ;;  %v2941_v2 = vpop.permute.xlu1 %577  ;;  %v2943_v11 = vpop.permute.xlu0 %575 }
  0xd9   : > { %4361 = vst [vmem:[#allocation70_spill] sm:$0xff] %v2941_v2 }
  0xda   : > { %4362 = vst [vmem:[#allocation71_spill] sm:$0xff] %v2943_v11 }
  0xdd   : > { %733 = vrot.lane.b32.xlu2 %v2427_v49, %s2251_s26 }
  0xde   : > { %731 = vrot.lane.b32.xlu1 %v2424_v48, %s2251_s26  ;;  %729 = vrot.lane.b32.xlu0 %v2430_v50, %s2251_s26 }
  0xdf   : > { %v2951_v52 = vpop.permute.xlu2 %635 }
  0xe0   : > { %4363 = vst [vmem:[#allocation72_spill] sm:$0xff] %v2951_v52  ;;  %v2953_v37 = vpop.permute.xlu1 %615  ;;  %v2955_v39 = vpop.permute.xlu0 %613 }
  0xe5   : > { %739 = vrot.lane.b32.xlu2 %v2502_v30, %s2251_s26 }
  0xe6   : > { %737 = vrot.lane.b32.xlu1 %v2459_v61, %s2251_s26  ;;  %735 = vrot.lane.b32.xlu0 %v2465_v63, %s2251_s26 }
  0xe7   : > { %v2963_v49 = vpop.permute.xlu2 %641 }
  0xe8   : > { %4364 = vst [vmem:[#allocation73_spill] sm:$0xff] %v2963_v49  ;;  %v2965_v48 = vpop.permute.xlu1 %621  ;;  %v2967_v50 = vpop.permute.xlu0 %619 }
  0xe9   : > { %4365 = vst [vmem:[#allocation74_spill] sm:$0xff] %v2965_v48  ;;  %v4389_v48 = vld [vmem:[#allocation6_spill] sm:$0xff] }
  0xea   : > { %4366 = vst [vmem:[#allocation75_spill] sm:$0xff] %v2967_v50 }
  0xed   : > { %745 = vrot.lane.b32.xlu2 %v2493_v20, %s2251_s26 }
  0xee   : > { %743 = vrot.lane.b32.xlu1 %v2490_v19, %s2251_s26  ;;  %741 = vrot.lane.b32.xlu0 %v2496_v23, %s2251_s26 }
  0xef   : > { %v2975_v2 = vpop.permute.xlu2 %647 }
  0xf0   : > { %v2977_v11 = vpop.permute.xlu1 %627  ;;  %v2979_v52 = vpop.permute.xlu0 %625 }
  0xf1   : > { %4367 = vst [vmem:[#allocation76_spill] sm:$0xff] %v2977_v11 }
  0xf2   : > { %4368 = vst [vmem:[#allocation77_spill] sm:$0xff] %v2979_v52 }
  0xf5   : > { %751 = vrot.lane.b32.xlu2 %v2568_v6, %s2251_s26 }
  0xf6   : > { %749 = vrot.lane.b32.xlu1 %v2525_v54, %s2251_s26  ;;  %747 = vrot.lane.b32.xlu0 %v2531_v56, %s2251_s26 }
  0xf7   : > { %v2987_v49 = vpop.permute.xlu2 %653 }
  0xf8   : > { %4369 = vst [vmem:[#allocation78_spill] sm:$0xff] %v2987_v49  ;;  %v2989_v23 = vpop.permute.xlu1 %633  ;;  %v2991_v29 = vpop.permute.xlu0 %631 }
  0xf9   : > { %4370 = vst [vmem:[#allocation79_spill] sm:$0xff] %v2989_v23 }
  0xfa   : > { %4371 = vst [vmem:[#allocation80_spill] sm:$0xff] %v2991_v29 }
  0xfd   : > { %757 = vrot.lane.b32.xlu2 %v2559_v44, %s2251_s26 }
  0xfe   : > { %755 = vrot.lane.b32.xlu1 %v2556_v42, %s2251_s26  ;;  %753 = vrot.lane.b32.xlu0 %v2562_v43, %s2251_s26 }
  0xff   : > { %v2999_v55 = vpop.permute.xlu2 %659 }
 0x100   : > { %4372 = vst [vmem:[#allocation81_spill] sm:$0xff] %v2999_v55  ;;  %v3001_v25 = vpop.permute.xlu1 %639  ;;  %v3003_v11 = vpop.permute.xlu0 %637  ;;  %v3018_v55 = vld [vmem:[%s2301_s23 + $0x188] sm:$0xff] }
 0x101   : > { %4373 = vst [vmem:[#allocation82_spill] sm:$0xff] %v3001_v25  ;;  %v3021_v25 = vld [vmem:[%s2301_s23 + $0x180] sm:$0xff] }
 0x102   : > { %4374 = vst [vmem:[#allocation83_spill] sm:$0xff] %v3003_v11 }
 0x103   : > { %4376 = vst [vmem:[#allocation85_spill] sm:$0xff] %v3018_v55 }
 0x104   : > { %4377 = vst [vmem:[#allocation86_spill] sm:$0xff] %v3021_v25 }
 0x105   : > { %763 = vrot.lane.b32.xlu2 %v2628_v34, %s2251_s26 }
 0x106   : > { %761 = vrot.lane.b32.xlu1 %v2591_v41, %s2251_s26  ;;  %759 = vrot.lane.b32.xlu0 %v2597_v17, %s2251_s26 }
 0x107   : > { %v3011_v23 = vpop.permute.xlu2 %665 }
 0x108   : > { %4375 = vst [vmem:[#allocation84_spill] sm:$0xff] %v3011_v23  ;;  %v3013_v29 = vpop.permute.xlu1 %645  ;;  %v3015_v52 = vpop.permute.xlu0 %643 }
 0x10d   : > { %769 = vrot.lane.b32.xlu2 %v3018_v55, %s2251_s26 }
 0x10e   : > { %767 = vrot.lane.b32.xlu1 %v3021_v25, %s2251_s26  ;;  %765 = vrot.lane.b32.xlu0 %v2622_v31, %s2251_s26  ;;  %v4384_v25 = vld [vmem:[#allocation4_spill] sm:$0xff] }
 0x10f   : > { %v3029_v34 = vpop.permute.xlu2 %671 }
 0x110   : > { %4378 = vst [vmem:[#allocation87_spill] sm:$0xff] %v3029_v34  ;;  %v3031_v41 = vpop.permute.xlu1 %651  ;;  %v3033_v11 = vpop.permute.xlu0 %649 }
 0x115   : > { %807 = vrot.lane.b32.xlu2 %v2331_v13, %s2252_s27 }
 0x116   : > { %805 = vrot.lane.b32.xlu1 %v2355_v22, %s2252_s27  ;;  %803 = vrot.lane.b32.xlu0 %v2342_v16, %s2252_s27 }
 0x117   : > { %v3041_v23 = vpop.permute.xlu2 %709 }
 0x118   : > { %v3043_v55 = vpop.permute.xlu1 %657  ;;  %v3045_v31 = vpop.permute.xlu0 %655 }
 0x119   : > { %4379 = vst [vmem:[#allocation88_spill] sm:$0xff] %v3043_v55  ;;  %v4385_v55 = vld [vmem:[#allocation2_spill] sm:$0xff] }
 0x11a   : > { %4380 = vst [vmem:[#allocation89_spill] sm:$0xff] %v3045_v31 }
 0x11d   : > { %813 = vrot.lane.b32.xlu2 %v2387_v35, %s2252_s27 }
 0x11e   : > { %811 = vrot.lane.b32.xlu1 %v2390_v36, %s2252_s27  ;;  %809 = vrot.lane.b32.xlu0 %v2352_v21, %s2252_s27 }
 0x11f   : > { %v3053_v34 = vpop.permute.xlu2 %715 }
 0x120   : > { %4381 = vst [vmem:[#allocation90_spill] sm:$0xff] %v3053_v34  ;;  %v3055_v22 = vpop.permute.xlu1 %663  ;;  %v3057_v16 = vpop.permute.xlu0 %661 }
 0x121   : > { %4382 = vst [vmem:[#allocation91_spill] sm:$0xff] %v3055_v22  ;;  %v4390_v22 = vld [vmem:[#allocation7_spill] sm:$0xff] }
 0x122   : > { %4383 = vst [vmem:[#allocation92_spill] sm:$0xff] %v3057_v16  ;;  %v4391_v16 = vld [vmem:[#allocation3_spill] sm:$0xff] }
 0x125   : > { %819 = vrot.lane.b32.xlu2 %v2418_v46, %s2252_s27 }
 0x126   : > { %817 = vrot.lane.b32.xlu1 %v4384_v25, %s2252_s27  ;;  %815 = vrot.lane.b32.xlu0 %v4385_v55, %s2252_s27 }
 0x127   : > { %v3065_v45 = vpop.permute.xlu2 %721 }
 0x128   : > { %4386 = vst [vmem:[#allocation4_spill] sm:$0xff] %v3065_v45  ;;  %v3067_v31 = vpop.permute.xlu1 %669  ;;  %v3069_v33 = vpop.permute.xlu0 %667  ;;  %v4394_v45 = vld [vmem:[#allocation9_spill] sm:$0xff] }
 0x129   : > { %4387 = vst [vmem:[#allocation2_spill] sm:$0xff] %v3067_v31  ;;  %v4395_v31 = vld [vmem:[#allocation10_spill] sm:$0xff] }
 0x12a   : > { %4388 = vst [vmem:[#allocation93_spill] sm:$0xff] %v3069_v33  ;;  %v4396_v33 = vld [vmem:[#allocation5_spill] sm:$0xff] }
 0x12d   : > { %825 = vrot.lane.b32.xlu2 %v4389_v48, %s2252_s27 }
 0x12e   : > { %823 = vrot.lane.b32.xlu1 %v4390_v22, %s2252_s27  ;;  %821 = vrot.lane.b32.xlu0 %v4391_v16, %s2252_s27 }
 0x12f   : > { %v3077_v15 = vpop.permute.xlu2 %727 }
 0x130   : > { %4392 = vst [vmem:[#allocation7_spill] sm:$0xff] %v3077_v15  ;;  %v3079_v49 = vpop.permute.xlu1 %707  ;;  %v3081_v18 = vpop.permute.xlu0 %673  ;;  %v4399_v15 = vld [vmem:[#allocation8_spill] sm:$0xff] }
 0x131   : > { %4393 = vst [vmem:[#allocation3_spill] sm:$0xff] %v3081_v18  ;;  %v4398_v18 = vld [vmem:[#allocation13_spill] sm:$0xff] }
 0x135   : > { %831 = vrot.lane.b32.xlu2 %v4394_v45, %s2252_s27 }
 0x136   : > { %829 = vrot.lane.b32.xlu1 %v4395_v31, %s2252_s27  ;;  %827 = vrot.lane.b32.xlu0 %v4396_v33, %s2252_s27 }
 0x137   : > { %v3089_v48 = vpop.permute.xlu2 %733 }
 0x138   : > { %4397 = vst [vmem:[#allocation94_spill] sm:$0xff] %v3089_v48  ;;  %v3091_v34 = vpop.permute.xlu1 %713  ;;  %v3093_v50 = vpop.permute.xlu0 %711  ;;  %v4402_v48 = vld [vmem:[#allocation11_spill] sm:$0xff] }
 0x13d   : > { %931 = vrot.lane.b32.xlu2 %v2771_v8, %s2253_s28 }
 0x13e   : > { %835 = vrot.lane.b32.xlu1 %v4398_v18, %s2252_s27  ;;  %833 = vrot.lane.b32.xlu0 %v4399_v15, %s2252_s27 }
 0x13f   : > { %v3101_v45 = vpop.permute.xlu2 %739 }
 0x140   : > { %v3103_v31 = vpop.permute.xlu1 %719  ;;  %v3105_v33 = vpop.permute.xlu0 %717 }
 0x141   : > { %4400 = vst [vmem:[#allocation95_spill] sm:$0xff] %v3103_v31 }
 0x142   : > { %4401 = vst [vmem:[#allocation96_spill] sm:$0xff] %v3105_v33 }
 0x145   : > { %1219 = vrot.lane.b32.xlu2 %v2799_v59, %s2254_s29 }
 0x146   : > { %1123 = vrot.lane.b32.xlu1 %v4402_v48, %s2255_s30  ;;  %1027 = vrot.lane.b32.xlu0 %v2490_v19, %s2256_s6 }
 0x147   : > { %v3113_v8 = vpop.permute.xlu2 %745 }
 0x148   : > { %v3115_v18 = vpop.permute.xlu1 %725  ;;  %v3117_v15 = vpop.permute.xlu0 %723 }
 0x149   : > { %4403 = vst [vmem:[#allocation11_spill] sm:$0xff] %v3115_v18 }
 0x14a   : > { %4404 = vst [vmem:[#allocation97_spill] sm:$0xff] %v3117_v15 }
 0x14d   : > { %1091 = vrot.lane.b32.xlu2 %v2331_v13, %s2255_s30  ;;  %v4407_v13 = vld [vmem:[#allocation12_spill] sm:$0xff] }
 0x14e   : > { %995 = vrot.lane.b32.xlu1 %v2304_v0, %s2256_s6  ;;  %899 = vrot.lane.b32.xlu0 %v2661_v10, %s2253_s28 }
 0x14f   : > { %v3125_v31 = vpop.permute.xlu2 %751 }
 0x150   : > { %v3127_v33 = vpop.permute.xlu1 %731  ;;  %v3129_v19 = vpop.permute.xlu0 %729 }
 0x151   : > { %4405 = vst [vmem:[#allocation98_spill] sm:$0xff] %v3127_v33  ;;  %v4411_v33 = vld [vmem:[#allocation16_spill] sm:$0xff] }
 0x152   : > { %4406 = vst [vmem:[#allocation99_spill] sm:$0xff] %v3129_v19 }
 0x155   : > { %933 = vrot.lane.b32.xlu2 %v2802_v4, %s2253_s28 }
 0x156   : > { %1187 = vrot.lane.b32.xlu1 %v2683_v47, %s2254_s29  ;;  %837 = vrot.lane.b32.xlu0 %v4407_v13, %s2252_s27 }
 0x157   : > { %v3137_v18 = vpop.permute.xlu2 %757 }
 0x158   : > { %4408 = vst [vmem:[#allocation100_spill] sm:$0xff] %v3137_v18  ;;  %v3139_v0 = vpop.permute.xlu1 %737  ;;  %v3141_v10 = vpop.permute.xlu0 %735 }
 0x159   : > { %4409 = vst [vmem:[#allocation101_spill] sm:$0xff] %v3139_v0 }
 0x15a   : > { %4410 = vst [vmem:[#allocation102_spill] sm:$0xff] %v3141_v10 }
 0x15d   : > { %1221 = vrot.lane.b32.xlu2 %v2796_v7, %s2254_s29 }
 0x15e   : > { %1125 = vrot.lane.b32.xlu1 %v4411_v33, %s2255_s30  ;;  %1029 = vrot.lane.b32.xlu0 %v2493_v20, %s2256_s6 }
 0x15f   : > { %v3149_v19 = vpop.permute.xlu2 %763 }
 0x160   : > { %4412 = vst [vmem:[#allocation16_spill] sm:$0xff] %v3149_v19  ;;  %v3151_v4 = vpop.permute.xlu1 %743  ;;  %v3153_v13 = vpop.permute.xlu0 %741 }
 0x165   : > { %1093 = vrot.lane.b32.xlu2 %v2352_v21, %s2255_s30 }
 0x166   : > { %997 = vrot.lane.b32.xlu1 %v2307_v1, %s2256_s6  ;;  %901 = vrot.lane.b32.xlu0 %v2658_v32, %s2253_s28 }
 0x167   : > { %v3161_v0 = vpop.permute.xlu2 %769 }
 0x168   : > { %4413 = vst [vmem:[#allocation103_spill] sm:$0xff] %v3161_v0  ;;  %v3163_v10 = vpop.permute.xlu1 %749  ;;  %v3165_v20 = vpop.permute.xlu0 %747  ;;  %v4415_v0 = vld [vmem:[#allocation15_spill] sm:$0xff] }
 0x16d   : > { %935 = vrot.lane.b32.xlu2 %v2799_v59, %s2253_s28 }
 0x16e   : > { %1189 = vrot.lane.b32.xlu1 %v2680_v9, %s2254_s29  ;;  %839 = vrot.lane.b32.xlu0 %v4402_v48, %s2252_s27 }
 0x16f   : > { %v3173_v21 = vpop.permute.xlu2 %807 }
 0x170   : > { %v3175_v1 = vpop.permute.xlu1 %755  ;;  %v3177_v32 = vpop.permute.xlu0 %753 }
 0x171   : > { %4414 = vst [vmem:[#allocation104_spill] sm:$0xff] %v3175_v1  ;;  %v4426_v1 = vld [vmem:[#allocation52_spill] sm:$0xff] }
 0x175   : > { %1223 = vrot.lane.b32.xlu2 %v2828_v27, %s2254_s29 }
 0x176   : > { %1127 = vrot.lane.b32.xlu1 %v4415_v0, %s2255_s30  ;;  %1031 = vrot.lane.b32.xlu0 %v2531_v56, %s2256_s6 }
 0x177   : > { %v3185_v59 = vpop.permute.xlu2 %813 }
 0x178   : > { %v3187_v19 = vpop.permute.xlu1 %761  ;;  %v3189_v48 = vpop.permute.xlu0 %759 }
 0x179   : > { %4416 = vst [vmem:[#allocation15_spill] sm:$0xff] %v3187_v19  ;;  %v1550_v19 = vld [vmem:[%s4208_s1 + $0x18] sm:$0xff] }
 0x17a   : > { %4417 = vst [vmem:[#allocation105_spill] sm:$0xff] %v3189_v48 }
 0x17d   : > { %1095 = vrot.lane.b32.xlu2 %v2390_v36, %s2255_s30 }
 0x17e   : > { %999 = vrot.lane.b32.xlu1 %v2371_v28, %s2256_s6  ;;  %903 = vrot.lane.b32.xlu0 %v2683_v47, %s2253_s28 }
 0x17f   : > { %v3197_v18 = vpop.permute.xlu2 %819 }
 0x180   : > { %4418 = vst [vmem:[#allocation106_spill] sm:$0xff] %v3197_v18  ;;  %v3199_v15 = vpop.permute.xlu1 %767  ;;  %v3201_v56 = vpop.permute.xlu0 %765 }
 0x181   : > { %4419 = vst [vmem:[#allocation107_spill] sm:$0xff] %v3199_v15  ;;  %v4422_v15 = vld [vmem:[#allocation14_spill] sm:$0xff] }
 0x182   : > { %4420 = vst [vmem:[#allocation108_spill] sm:$0xff] %v3201_v56 }
 0x185   : > { %937 = vrot.lane.b32.xlu2 %v2796_v7, %s2253_s28 }
 0x186   : > { %1191 = vrot.lane.b32.xlu1 %v2677_v53, %s2254_s29  ;;  %841 = vrot.lane.b32.xlu0 %v4411_v33, %s2252_s27 }
 0x187   : > { %v3209_v36 = vpop.permute.xlu2 %825 }
 0x188   : > { %4421 = vst [vmem:[#allocation109_spill] sm:$0xff] %v3209_v36  ;;  %v3211_v28 = vpop.permute.xlu1 %805  ;;  %v3213_v47 = vpop.permute.xlu0 %803  ;;  %v1551_v36 = vld [vmem:[%s4208_s1 + $0x20] sm:$0xf] }
 0x189   : > { %2183 = vmatpush.msk.msra.mxu2 %vm1653_vm2, %v1551_v36  ;;  %2114 = vmatpush.msk.msra.mxu0 %vm1653_vm2, %v1551_v36 }
 0x18b   : > { %2184 = vmatpush.msra.mxu2 %v1550_v19  ;;  %1669 = vmatpush.msra.mxu0 %v1550_v19 }
 0x18d   : > { %1225 = vrot.lane.b32.xlu2 %v2825_v14, %s2254_s29 }
 0x18e   : > { %1129 = vrot.lane.b32.xlu1 %v4422_v15, %s2255_s30  ;;  %1033 = vrot.lane.b32.xlu0 %v2525_v54, %s2256_s6  ;;  %v1549_v54 = vld [vmem:[%s4208_s1 + $0x10] sm:$0xff] }
 0x18f   : > { %v3221_v7 = vpop.permute.xlu2 %831  ;;  %2185 = vmatpush.msra.mxu2 %v1549_v54  ;;  %1670 = vmatpush.msra.mxu0 %v1549_v54  ;;  %v4427_v54 = vld [vmem:[#allocation19_spill] sm:$0xff] }
 0x190   : > { %4423 = vst [vmem:[#allocation14_spill] sm:$0xff] %v3221_v7  ;;  %v3223_v56 = vpop.permute.xlu1 %811  ;;  %v3225_v33 = vpop.permute.xlu0 %809 }
 0x195   : > { %1097 = vrot.lane.b32.xlu2 %v2387_v35, %s2255_s30  ;;  %v1548_v35 = vld [vmem:[%s4208_s1 + $0x8] sm:$0xff] }
 0x196   : > { %1001 = vrot.lane.b32.xlu1 %v2365_v26, %s2256_s6  ;;  %905 = vrot.lane.b32.xlu0 %v2680_v9, %s2253_s28  ;;  %v1547_v26 = vld [vmem:[%s4208_s1] sm:$0xff] }
 0x197   : > { %v932_v7 = vpop.permute.xlu2 %931  ;;  %2186 = vmatpush.msra.mxu2 %v1548_v35  ;;  %1671 = vmatpush.msra.mxu0 %v1548_v35 }
 0x198   : > { %v3244_v48 = vpop.permute.xlu1 %817  ;;  %v3246_v36 = vpop.permute.xlu0 %815 }
 0x199   : > { %2187 = vmatpush.msra.mxu2 %v1547_v26  ;;  %1672 = vmatpush.msra.mxu0 %v1547_v26 }
 0x19d   : > { %939 = vrot.lane.b32.xlu2 %v2828_v27, %s2253_s28 }
 0x19e   : > { %1193 = vrot.lane.b32.xlu1 %v2704_v58, %s2254_s29  ;;  %843 = vrot.lane.b32.xlu0 %v4415_v0, %s2252_s27 }
 0x19f   : > { %v1220_v9 = vpop.permute.xlu2 %1219 }
 0x1a0   : > { %v3260_v19 = vpop.permute.xlu1 %823  ;;  %v3262_v18 = vpop.permute.xlu0 %821 }
 0x1a1   : > { %4424 = vst [vmem:[#allocation110_spill] sm:$0xff] %v3260_v19 }
 0x1a2   : > { %4425 = vst [vmem:[#allocation111_spill] sm:$0xff] %v3262_v18 }
 0x1a5   : > { %1227 = vrot.lane.b32.xlu2 %v4426_v1, %s2254_s29 }
 0x1a6   : > { %1131 = vrot.lane.b32.xlu1 %v4427_v54, %s2255_s30  ;;  %1035 = vrot.lane.b32.xlu0 %v2568_v6, %s2256_s6  ;;  %v1300_v6 = vsel %vm1283_vm3, %v2465_v63, %v2868_v62 }
 0x1a7   : > { %v1092_v27 = vpop.permute.xlu2 %1091 }
 0x1a8   : > { %v3270_v35 = vpop.permute.xlu1 %829  ;;  %v3272_v26 = vpop.permute.xlu0 %827 }
 0x1a9   : > { %4428 = vst [vmem:[#allocation52_spill] sm:$0xff] %v3270_v35  ;;  %v1333_v35 = vsel %vm1316_vm4, %v1300_v6, %v3015_v52  ;;  %v4430_v6 = vld [vmem:[#allocation35_spill] sm:$0xff] }
 0x1ad   : > { %1099 = vrot.lane.b32.xlu2 %v4385_v55, %s2255_s30  ;;  %v4429_v55 = vld [vmem:[#allocation28_spill] sm:$0xff] }
 0x1ae   : > { %1003 = vrot.lane.b32.xlu1 %v2359_v24, %s2256_s6  ;;  %907 = vrot.lane.b32.xlu0 %v2677_v53, %s2253_s28  ;;  %v1366_v24 = vsel %vm1349_vm5, %v1333_v35, %v3101_v45 }
 0x1af   : > { %v934_v0 = vpop.permute.xlu2 %933 }
 0x1b0   : > { %v836_v19 = vpop.permute.xlu1 %835  ;;  %v3280_v18 = vpop.permute.xlu0 %833 }
 0x1b1   : > { %v1399_v53 = vsel %vm1382_vm6, %v1366_v24, %v836_v19  ;;  %v4431_v24 = vld [vmem:[#allocation18_spill] sm:$0xff] }
 0x1b2   : > { %v1432_v62 = vsel %vm1415_vm7, %v1399_v53, %v932_v7 }
 0x1b5   : > { %941 = vrot.lane.b32.xlu2 %v2825_v14, %s2253_s28 }
 0x1b6   : > { %1195 = vrot.lane.b32.xlu1 %v4429_v55, %s2254_s29  ;;  %845 = vrot.lane.b32.xlu0 %v4422_v15, %s2252_s27  ;;  %v2208_v15 = vld [vmem:[%s2301_s23] sm:$0xff] }
 0x1b7   : > { %v1222_v63 = vpop.permute.xlu2 %1221  ;;  %v1284_v7 = vsel %vm1283_vm3, %v2208_v15, %v4430_v6 }
 0x1b8   : > { %v1124_v45 = vpop.permute.xlu1 %1123  ;;  %v1028_v52 = vpop.permute.xlu0 %1027  ;;  %v1317_v53 = vsel %vm1316_vm4, %v1284_v7, %v2903_v3  ;;  %v4432_v7 = vld [vmem:[#allocation45_spill] sm:$0xff] }
 0x1b9   : > { %v1465_v19 = vsel %vm1448_vm8, %v1432_v62, %v1028_v52  ;;  %v1350_v62 = vsel %vm1349_vm5, %v1317_v53, %v3079_v49  ;;  %v1301_v53 = vsel %vm1283_vm3, %v2459_v61, %v4432_v7 }
 0x1ba   : > { %v1498_v14 = vsel %vm1481_vm9, %v1465_v19, %v1124_v45  ;;  %v1383_v19 = vsel %vm1382_vm6, %v1350_v62, %v3213_v47 }
 0x1bb   : > { %v1531_v35 = vsel %vm1514_vm10, %v1498_v14, %v1220_v9 }
 0x1bc   : > { %2131 = vmatmul.msk.f32.vlgmr.msra.gmra.mxu2 %vm1556_vm11, %v1531_v35 }
 0x1bd   : > { %1229 = vrot.lane.b32.xlu2 %v2853_v12, %s2254_s29 }
 0x1be   : > { %1133 = vrot.lane.b32.xlu1 %v4431_v24, %s2255_s30  ;;  %1037 = vrot.lane.b32.xlu0 %v2562_v43, %s2256_s6  ;;  %v3321_v43 = vld [vmem:[%s2301_s23 + $0x68] sm:$0xff] }
 0x1bf   : > { %v1094_v9 = vpop.permute.xlu2 %1093 }
 0x1c0   : > { %v996_v45 = vpop.permute.xlu1 %995  ;;  %v900_v52 = vpop.permute.xlu0 %899 }
 0x1c1   : > { %v1416_v14 = vsel %vm1415_vm7, %v1383_v19, %v900_v52 }
 0x1c2   : > { %v1449_v35 = vsel %vm1448_vm8, %v1416_v14, %v996_v45 }
 0x1c3   : > { %v1482_v49 = vsel %vm1481_vm9, %v1449_v35, %v1092_v27  ;;  %v4433_v27 = vld [vmem:[#allocation27_spill] sm:$0xff]  ;;  %v4434_v35 = vld [vmem:[#allocation41_spill] sm:$0xff] }
 0x1c5   : > { %1101 = vrot.lane.b32.xlu2 %v4384_v25, %s2255_s30  ;;  %v1334_v25 = vsel %vm1316_vm4, %v1301_v53, %v3013_v29 }
 0x1c6   : > { %1005 = vrot.lane.b32.xlu1 %v3321_v43, %s2256_s6  ;;  %909 = vrot.lane.b32.xlu0 %v2704_v58, %s2253_s28  ;;  %v1367_v58 = vsel %vm1349_vm5, %v1334_v25, %v3153_v13 }
 0x1c7   : > { %v936_v3 = vpop.permute.xlu2 %935 }
 0x1c8   : > { %v1188_v15 = vpop.permute.xlu1 %1187  ;;  %v838_v47 = vpop.permute.xlu0 %837 }
 0x1c9   : > { %v1515_v6 = vsel %vm1514_vm10, %v1482_v49, %v1188_v15  ;;  %v1400_v62 = vsel %vm1382_vm6, %v1367_v58, %v838_v47 }
 0x1ca   : > { %2115 = vmatmul.msk.f32.vlgmr.msra.gmra.mxu0 %vm1556_vm11, %v1515_v6  ;;  %v1433_v45 = vsel %vm1415_vm7, %v1400_v62, %v934_v0  ;;  %v4435_v0 = vld [vmem:[#allocation17_spill] sm:$0xff] }
 0x1cd   : > { %943 = vrot.lane.b32.xlu2 %v4426_v1, %s2253_s28  ;;  %v2210_v1 = vld [vmem:[%s2301_s23 + $0x8] sm:$0xff] }
 0x1ce   : > { %1197 = vrot.lane.b32.xlu1 %v4433_v27, %s2254_s29  ;;  %847 = vrot.lane.b32.xlu0 %v4427_v54, %s2252_s27  ;;  %v1285_v54 = vsel %vm1283_vm3, %v2210_v1, %v4434_v35  ;;  %v4438_v1 = vld [vmem:[#allocation34_spill] sm:$0xff] }
 0x1cf   : > { %v1224_v61 = vpop.permute.xlu2 %1223  ;;  %v1318_v49 = vsel %vm1316_vm4, %v1285_v54, %v2955_v39 }
 0x1d0   : > { %v1126_v52 = vpop.permute.xlu1 %1125  ;;  %v1030_v19 = vpop.permute.xlu0 %1029  ;;  %v1351_v15 = vsel %vm1349_vm5, %v1318_v49, %v3041_v23 }
 0x1d1   : > { %v1466_v29 = vsel %vm1448_vm8, %v1433_v45, %v1030_v19  ;;  %v1384_v7 = vsel %vm1382_vm6, %v1351_v15, %v3211_v28  ;;  %v1302_v45 = vsel %vm1283_vm3, %v2502_v30, %v2892_v57 }
 0x1d2   : > { %v1499_v13 = vsel %vm1481_vm9, %v1466_v29, %v1126_v52 }
 0x1d3   : > { %v1532_v14 = vsel %vm1514_vm10, %v1499_v13, %v1222_v63 }
 0x1d4   : > { %2132 = vmatmul.msk.f32.gmra.mxu2 %vm1556_vm11, %v1532_v14  ;;  %v2212_v14 = vld [vmem:[%s2301_s23 + $0x18] sm:$0xff] }
 0x1d5   : > { %1231 = vrot.lane.b32.xlu2 %v2850_v60, %s2254_s29 }
 0x1d6   : > { %1135 = vrot.lane.b32.xlu1 %v4435_v0, %s2255_s30  ;;  %1039 = vrot.lane.b32.xlu0 %v2556_v42, %s2256_s6  ;;  %v3369_v42 = vld [vmem:[%s2301_s23 + $0x78] sm:$0xff] }
 0x1d7   : > { %v1096_v63 = vpop.permute.xlu2 %1095 }
 0x1d8   : > { %v998_v47 = vpop.permute.xlu1 %997  ;;  %v902_v6 = vpop.permute.xlu0 %901 }
 0x1d9   : > { %v1417_v53 = vsel %vm1415_vm7, %v1384_v7, %v902_v6 }
 0x1da   : > { %v1450_v25 = vsel %vm1448_vm8, %v1417_v53, %v998_v47 }
 0x1db   : > { %v1483_v23 = vsel %vm1481_vm9, %v1450_v25, %v1094_v9  ;;  %v4436_v9 = vld [vmem:[#allocation32_spill] sm:$0xff] }
 0x1dd   : > { %1103 = vrot.lane.b32.xlu2 %v2418_v46, %s2255_s30  ;;  %v1335_v46 = vsel %vm1316_vm4, %v1302_v45, %v2975_v2 }
 0x1de   : > { %1007 = vrot.lane.b32.xlu1 %v3369_v42, %s2256_s6  ;;  %911 = vrot.lane.b32.xlu0 %v4429_v55, %s2253_s28  ;;  %v1368_v55 = vsel %vm1349_vm5, %v1335_v46, %v3151_v4 }
 0x1df   : > { %v938_v39 = vpop.permute.xlu2 %937 }
 0x1e0   : > { %v1190_v58 = vpop.permute.xlu1 %1189  ;;  %v840_v28 = vpop.permute.xlu0 %839 }
 0x1e1   : > { %v1516_v62 = vsel %vm1514_vm10, %v1483_v23, %v1190_v58  ;;  %v1401_v52 = vsel %vm1382_vm6, %v1368_v55, %v840_v28  ;;  %v3426_v23 = vld [vmem:[%s2301_s23 + $0xe0] sm:$0xff]  ;;  %v4440_v28 = vld [vmem:[#allocation31_spill] sm:$0xff] }
 0x1e2   : > { %2116 = vmatmul.msk.f32.gmra.mxu0 %vm1556_vm11, %v1516_v62  ;;  %v1434_v57 = vsel %vm1415_vm7, %v1401_v52, %v936_v3  ;;  %v4439_v3 = vld [vmem:[#allocation22_spill] sm:$0xff]  ;;  %v4441_v52 = vld [vmem:[#allocation40_spill] sm:$0xff] }
 0x1e5   : > { %945 = vrot.lane.b32.xlu2 %v2853_v12, %s2253_s28  ;;  %v4437_v12 = vld [vmem:[#allocation56_spill] sm:$0xff] }
 0x1e6   : > { %1199 = vrot.lane.b32.xlu1 %v4436_v9, %s2254_s29  ;;  %849 = vrot.lane.b32.xlu0 %v4431_v24, %s2252_s27  ;;  %v1286_v24 = vsel %vm1283_vm3, %v2212_v14, %v4438_v1 }
 0x1e7   : > { %v1226_v30 = vpop.permute.xlu2 %1225  ;;  %v1319_v35 = vsel %vm1316_vm4, %v1286_v24, %v2953_v37 }
 0x1e8   : > { %v1128_v19 = vpop.permute.xlu1 %1127  ;;  %v1032_v29 = vpop.permute.xlu0 %1031  ;;  %v1352_v54 = vsel %vm1349_vm5, %v1319_v35, %v3093_v50  ;;  %v2217_v35 = vld [vmem:[%s2301_s23 + $0xf0] sm:$0xff] }
 0x1e9   : > { %v1467_v2 = vsel %vm1448_vm8, %v1434_v57, %v1032_v29  ;;  %v1385_v47 = vsel %vm1382_vm6, %v1352_v54, %v3173_v21  ;;  %v4443_v54 = vld [vmem:[#allocation49_spill] sm:$0xff] }
 0x1ea   : > { %v1500_v4 = vsel %vm1481_vm9, %v1467_v2, %v1128_v19 }
 0x1eb   : > { %v1533_v13 = vsel %vm1514_vm10, %v1500_v4, %v1224_v61 }
 0x1ec   : > { %2133 = vmatmul.msk.f32.gmra.mxu2 %vm1556_vm11, %v1533_v13 }
 0x1ed   : > { %1233 = vrot.lane.b32.xlu2 %v4437_v12, %s2254_s29 }
 0x1ee   : > { %1137 = vrot.lane.b32.xlu1 %v4439_v3, %s2255_s30  ;;  %1041 = vrot.lane.b32.xlu0 %v2559_v44, %s2256_s6  ;;  %v3417_v44 = vld [vmem:[%s2301_s23 + $0x80] sm:$0xff] }
 0x1ef   : > { %v1098_v61 = vpop.permute.xlu2 %1097 }
 0x1f0   : > { %v1000_v49 = vpop.permute.xlu1 %999  ;;  %v904_v15 = vpop.permute.xlu0 %903 }
 0x1f1   : > { %v1418_v6 = vsel %vm1415_vm7, %v1385_v47, %v904_v15 }
 0x1f2   : > { %v1451_v7 = vsel %vm1448_vm8, %v1418_v6, %v1000_v49  ;;  %v1304_v49 = vsel %vm1283_vm3, %v2217_v35, %v4443_v54 }
 0x1f3   : > { %v1484_v50 = vsel %vm1481_vm9, %v1451_v7, %v1096_v63 }
 0x1f5   : > { %1105 = vrot.lane.b32.xlu2 %v4391_v16, %s2255_s30  ;;  %v1303_v16 = vsel %vm1283_vm3, %v3426_v23, %v2890_v40 }
 0x1f6   : > { %1009 = vrot.lane.b32.xlu1 %v3417_v44, %s2256_s6  ;;  %913 = vrot.lane.b32.xlu0 %v4433_v27, %s2253_s28  ;;  %v1336_v58 = vsel %vm1316_vm4, %v1303_v16, %v3033_v11  ;;  %v4447_v16 = vld [vmem:[#allocation75_spill] sm:$0xff] }
 0x1f7   : > { %v940_v37 = vpop.permute.xlu2 %939  ;;  %v1369_v27 = vsel %vm1349_vm5, %v1336_v58, %v3113_v8 }
 0x1f8   : > { %v1192_v53 = vpop.permute.xlu1 %1191  ;;  %v842_v21 = vpop.permute.xlu0 %841 }
 0x1f9   : > { %v1517_v25 = vsel %vm1514_vm10, %v1484_v50, %v1192_v53  ;;  %v1402_v63 = vsel %vm1382_vm6, %v1369_v27, %v842_v21  ;;  %v4445_v21 = vld [vmem:[#allocation25_spill] sm:$0xff] }
 0x1fa   : > { %2117 = vmatmul.msk.f32.gmra.mxu0 %vm1556_vm11, %v1517_v25  ;;  %v1435_v62 = vsel %vm1415_vm7, %v1402_v63, %v938_v39  ;;  %v4442_v39 = vld [vmem:[#allocation21_spill] sm:$0xff]  ;;  %v4448_v63 = vld [vmem:[#allocation90_spill] sm:$0xff] }
 0x1fb   : > { %v3504_v25 = vld [vmem:[%s2301_s23 + $0x158] sm:$0xff] }
 0x1fd   : > { %947 = vrot.lane.b32.xlu2 %v2850_v60, %s2253_s28  ;;  %v2215_v60 = vld [vmem:[%s2301_s23 + $0x20] sm:$0xff] }
 0x1fe   : > { %1201 = vrot.lane.b32.xlu1 %v4440_v28, %s2254_s29  ;;  %851 = vrot.lane.b32.xlu0 %v4435_v0, %s2252_s27  ;;  %v1287_v0 = vsel %vm1283_vm3, %v2215_v60, %v4441_v52  ;;  %v3519_v60 = vld [vmem:[%s2301_s23 + $0x98] sm:$0xff] }
 0x1ff   : > { %v1228_v40 = vpop.permute.xlu2 %1227  ;;  %v1320_v57 = vsel %vm1316_vm4, %v1287_v0, %v2915_v5 }
 0x200   : > { %v1130_v45 = vpop.permute.xlu1 %1129  ;;  %v1034_v46 = vpop.permute.xlu0 %1033  ;;  %v1353_v19 = vsel %vm1349_vm5, %v1320_v57, %v3091_v34 }
 0x201   : > { %v1468_v11 = vsel %vm1448_vm8, %v1435_v62, %v1034_v46  ;;  %v1386_v4 = vsel %vm1382_vm6, %v1353_v19, %v3225_v33 }
 0x202   : > { %v1501_v8 = vsel %vm1481_vm9, %v1468_v11, %v1130_v45 }
 0x203   : > { %v1534_v55 = vsel %vm1514_vm10, %v1501_v8, %v1226_v30 }
 0x204   : > { %2134 = vmatmul.msk.f32.gmra.mxu2 %vm1556_vm11, %v1534_v55  ;;  %v4449_v55 = vld [vmem:[#allocation6_spill] sm:$0xff] }
 0x205   : > { %1235 = vrot.lane.b32.xlu2 %v2879_v51, %s2254_s29 }
 0x206   : > { %1139 = vrot.lane.b32.xlu1 %v4442_v39, %s2255_s30  ;;  %1043 = vrot.lane.b32.xlu0 %v2597_v17, %s2256_s6  ;;  %v3468_v17 = vld [vmem:[%s2301_s23 + $0x90] sm:$0xff] }
 0x207   : > { %v1100_v30 = vpop.permute.xlu2 %1099 }
 0x208   : > { %v1002_v29 = vpop.permute.xlu1 %1001  ;;  %v906_v2 = vpop.permute.xlu0 %905 }
 0x209   : > { %v1419_v13 = vsel %vm1415_vm7, %v1386_v4, %v906_v2  ;;  %v4450_v2 = vld [vmem:[#allocation63_spill] sm:$0xff] }
 0x20a   : > { %v1452_v14 = vsel %vm1448_vm8, %v1419_v13, %v1002_v29  ;;  %v2221_v29 = vld [vmem:[%s2301_s23 + $0xf8] sm:$0xff]  ;;  %v1802_v13 = vld [vmem:[%s4210_s3] sm:$0xf] }
 0x20b   : > { %v1485_v34 = vsel %vm1481_vm9, %v1452_v14, %v1098_v61  ;;  %v4444_v61 = vld [vmem:[#allocation30_spill] sm:$0xff]  ;;  %v1305_v4 = vsel %vm1283_vm3, %v2221_v29, %v4450_v2  ;;  %2147 = vmatpush.msk.msra.mxu1 %vm1653_vm2, %v1802_v13  ;;  %2188 = vmatpush.msk.msra.mxu3 %vm1653_vm2, %v1802_v13 }
 0x20c   : > { %v4451_v14 = vld [vmem:[#allocation78_spill] sm:$0xff] }
 0x20d   : > { %1107 = vrot.lane.b32.xlu2 %v4390_v22, %s2255_s30  ;;  %v1337_v22 = vsel %vm1316_vm4, %v1304_v49, %v3031_v41 }
 0x20e   : > { %1011 = vrot.lane.b32.xlu1 %v3468_v17, %s2256_s6  ;;  %915 = vrot.lane.b32.xlu0 %v4436_v9, %s2253_s28  ;;  %v1370_v9 = vsel %vm1349_vm5, %v1337_v22, %v3165_v20 }
 0x20f   : > { %v942_v5 = vpop.permute.xlu2 %941 }
 0x210   : > { %v1194_v1 = vpop.permute.xlu1 %1193  ;;  %v844_v33 = vpop.permute.xlu0 %843 }
 0x211   : > { %v1518_v24 = vsel %vm1514_vm10, %v1485_v34, %v1194_v1  ;;  %v1403_v15 = vsel %vm1382_vm6, %v1370_v9, %v844_v33  ;;  %v4452_v1 = vld [vmem:[#allocation38_spill] sm:$0xff]  ;;  %v2222_v9 = vld [vmem:[%s2301_s23 + $0x38] sm:$0xff] }
 0x212   : > { %2118 = vmatmul.msk.f32.gmra.mxu0 %vm1556_vm11, %v1518_v24  ;;  %v1436_v6 = vsel %vm1415_vm7, %v1403_v15, %v940_v37  ;;  %v4446_v37 = vld [vmem:[#allocation20_spill] sm:$0xff]  ;;  %v4454_v15 = vld [vmem:[#allocation26_spill] sm:$0xff] }
 0x215   : > { %949 = vrot.lane.b32.xlu2 %v4437_v12, %s2253_s28  ;;  %v2218_v12 = vld [vmem:[%s2301_s23 + $0x30] sm:$0xff] }
 0x216   : > { %1203 = vrot.lane.b32.xlu1 %v4444_v61, %s2254_s29  ;;  %853 = vrot.lane.b32.xlu0 %v4439_v3, %s2252_s27  ;;  %v1288_v3 = vsel %vm1283_vm3, %v2218_v12, %v4445_v21 }
 0x217   : > { %v1230_v47 = vpop.permute.xlu2 %1229  ;;  %v1321_v58 = vsel %vm1316_vm4, %v1288_v3, %v4447_v16 }
 0x218   : > { %v1132_v7 = vpop.permute.xlu1 %1131  ;;  %v1036_v41 = vpop.permute.xlu0 %1035 }
 0x219   : > { %v1469_v50 = vsel %vm1448_vm8, %v1436_v6, %v1036_v41  ;;  %v3560_v6 = vld [vmem:[%s2301_s23 + $0x168] sm:$0xff] }
 0x21a   : > { %v1502_v20 = vsel %vm1481_vm9, %v1469_v50, %v1132_v7  ;;  %v4456_v7 = vld [vmem:[#allocation74_spill] sm:$0xff]  ;;  %v4457_v50 = vld [vmem:[#allocation96_spill] sm:$0xff] }
 0x21b   : > { %v1535_v53 = vsel %vm1514_vm10, %v1502_v20, %v1228_v40  ;;  %v1354_v40 = vsel %vm1349_vm5, %v1321_v58, %v4448_v63  ;;  %v4458_v58 = vld [vmem:[#allocation5_spill] sm:$0xff]  ;;  %v3575_v63 = vld [vmem:[%s2301_s23 + $0xa8] sm:$0xff] }
 0x21c   : > { %2135 = vmatmul.msk.f32.gmra.mxu2 %vm1556_vm11, %v1535_v53  ;;  %v1387_v46 = vsel %vm1382_vm6, %v1354_v40, %v3223_v56 }
 0x21d   : > { %1237 = vrot.lane.b32.xlu2 %v2876_v38, %s2254_s29 }
 0x21e   : > { %1141 = vrot.lane.b32.xlu1 %v4446_v37, %s2255_s30  ;;  %1045 = vrot.lane.b32.xlu0 %v3504_v25, %s2256_s6 }
 0x21f   : > { %v1102_v27 = vpop.permute.xlu2 %1101 }
 0x220   : > { %v1004_v62 = vpop.permute.xlu1 %1003  ;;  %v908_v45 = vpop.permute.xlu0 %907 }
 0x221   : > { %v1420_v11 = vsel %vm1415_vm7, %v1387_v46, %v908_v45 }
 0x222   : > { %v1453_v8 = vsel %vm1448_vm8, %v1420_v11, %v1004_v62  ;;  %v2225_v11 = vld [vmem:[%s2301_s23 + $0x108] sm:$0xff] }
 0x223   : > { %v1486_v0 = vsel %vm1481_vm9, %v1453_v8, %v1100_v30  ;;  %v4459_v8 = vld [vmem:[#allocation62_spill] sm:$0xff] }
 0x225   : > { %1109 = vrot.lane.b32.xlu2 %v4449_v55, %s2255_s30  ;;  %v1306_v55 = vsel %vm1283_vm3, %v2225_v11, %v4459_v8  ;;  %v4468_v11 = vld [vmem:[#allocation53_spill] sm:$0xff] }
 0x226   : > { %1013 = vrot.lane.b32.xlu1 %v3519_v60, %s2256_s6  ;;  %917 = vrot.lane.b32.xlu0 %v4440_v28, %s2253_s28  ;;  %v1338_v28 = vsel %vm1316_vm4, %v1305_v4, %v4451_v14 }
 0x227   : > { %v944_v52 = vpop.permute.xlu2 %943  ;;  %v1371_v30 = vsel %vm1349_vm5, %v1338_v28, %v3163_v10 }
 0x228   : > { %v1196_v57 = vpop.permute.xlu1 %1195  ;;  %v846_v56 = vpop.permute.xlu0 %845 }
 0x229   : > { %v1519_v19 = vsel %vm1514_vm10, %v1486_v0, %v1196_v57  ;;  %v1404_v34 = vsel %vm1382_vm6, %v1371_v30, %v846_v56  ;;  %v4460_v0 = vld [vmem:[#allocation89_spill] sm:$0xff] }
 0x22a   : > { %2119 = vmatmul.msk.f32.gmra.mxu0 %vm1556_vm11, %v1519_v19  ;;  %v1437_v24 = vsel %vm1415_vm7, %v1404_v34, %v942_v5  ;;  %v4455_v5 = vld [vmem:[#allocation24_spill] sm:$0xff]  ;;  %v1339_v57 = vsel %vm1316_vm4, %v1306_v55, %v4460_v0  ;;  %v4461_v19 = vld [vmem:[#allocation37_spill] sm:$0xff] }
 0x22b   : > { %v4469_v0 = vld [vmem:[#allocation88_spill] sm:$0xff] }
 0x22d   : > { %951 = vrot.lane.b32.xlu2 %v2879_v51, %s2253_s28  ;;  %v4453_v51 = vld [vmem:[#allocation59_spill] sm:$0xff] }
 0x22e   : > { %1205 = vrot.lane.b32.xlu1 %v4452_v1, %s2254_s29  ;;  %855 = vrot.lane.b32.xlu0 %v4442_v39, %s2252_s27  ;;  %v1289_v39 = vsel %vm1283_vm3, %v2222_v9, %v4454_v15  ;;  %v4466_v15 = vld [vmem:[#allocation95_spill] sm:$0xff] }
 0x22f   : > { %v1232_v33 = vpop.permute.xlu2 %1231 }
 0x230   : > { %v1134_v35 = vpop.permute.xlu1 %1133  ;;  %v1038_v54 = vpop.permute.xlu0 %1037 }
 0x231   : > { %v1470_v49 = vsel %vm1448_vm8, %v1437_v24, %v1038_v54  ;;  %v4463_v24 = vld [vmem:[#allocation47_spill] sm:$0xff] }
 0x232   : > { %v1503_v10 = vsel %vm1481_vm9, %v1470_v49, %v1134_v35  ;;  %v4464_v54 = vld [vmem:[#allocation23_spill] sm:$0xff]  ;;  %v3622_v49 = vld [vmem:[%s2301_s23 + $0x170] sm:$0xff] }
 0x233   : > { %v1536_v22 = vsel %vm1514_vm10, %v1503_v10, %v1230_v47  ;;  %v1322_v47 = vsel %vm1316_vm4, %v1289_v39, %v4456_v7 }
 0x234   : > { %2136 = vmatmul.msk.f32.gmra.mxu2 %vm1556_vm11, %v1536_v22  ;;  %v1355_v20 = vsel %vm1349_vm5, %v1322_v47, %v4457_v50 }
 0x235   : > { %1239 = vrot.lane.b32.xlu2 %v4453_v51, %s2254_s29  ;;  %v1388_v21 = vsel %vm1382_vm6, %v1355_v20, %v3185_v59 }
 0x236   : > { %1143 = vrot.lane.b32.xlu1 %v4455_v5, %s2255_s30  ;;  %1047 = vrot.lane.b32.xlu0 %v3560_v6, %s2256_s6 }
 0x237   : > { %v1104_v41 = vpop.permute.xlu2 %1103 }
 0x238   : > { %v1006_v53 = vpop.permute.xlu1 %1005  ;;  %v910_v12 = vpop.permute.xlu0 %909 }
 0x239   : > { %v1421_v3 = vsel %vm1415_vm7, %v1388_v21, %v910_v12  ;;  %v4467_v12 = vld [vmem:[#allocation10_spill] sm:$0xff]  ;;  %v3641_v21 = vld [vmem:[%s2301_s23 + $0xb0] sm:$0xff] }
 0x23a   : > { %v1454_v16 = vsel %vm1448_vm8, %v1421_v3, %v1006_v53 }
 0x23b   : > { %v1487_v62 = vsel %vm1481_vm9, %v1454_v16, %v1102_v27  ;;  %v3599_v27 = vld [vmem:[%s4209_s2] ss:$0 sm:$0xff] }
 0x23d   : > { %1111 = vrot.lane.b32.xlu2 %v4458_v58, %s2255_s30 }
 0x23e   : > { %1015 = vrot.lane.b32.xlu1 %v3575_v63, %s2256_s6  ;;  %919 = vrot.lane.b32.xlu0 %v4444_v61, %s2253_s28  ;;  %v1372_v61 = vsel %vm1349_vm5, %v1339_v57, %v3125_v31 }
 0x23f   : > { %v3581_v40 = vpop.permute.xlu2 %945  ;;  %v3628_v22 = vpop.f32.mrf.mxu2 }
 0x240   : > { %v1198_v59 = vpop.permute.xlu1 %1197  ;;  %v848_v45 = vpop.permute.xlu0 %847 }
 0x241   : > { %v1520_v46 = vsel %vm1514_vm10, %v1487_v62, %v1198_v59  ;;  %v1405_v56 = vsel %vm1382_vm6, %v1372_v61, %v848_v45  ;;  %v4470_v61 = vld [vmem:[#allocation86_spill] sm:$0xff] }
 0x242   : > { %2120 = vmatmul.msk.f32.gmra.mxu0 %vm1556_vm11, %v1520_v46  ;;  %v1438_v2 = vsel %vm1415_vm7, %v1405_v56, %v944_v52  ;;  %v2226_v52 = vld [vmem:[%s2301_s23 + $0x48] sm:$0xff]  ;;  %v2229_v46 = vld [vmem:[%s2301_s23 + $0x110] sm:$0xff]  ;;  %v497_v56 = vrot.slane %v4470_v61, 2 }
 0x243   : > { %v1290_v35 = vsel %vm1283_vm3, %v2226_v52, %v4463_v24  ;;  %v1307_v8 = vsel %vm1283_vm3, %v2229_v46, %v4468_v11 }
 0x245   : > { %953 = vrot.lane.b32.xlu2 %v2876_v38, %s2253_s28 }
 0x246   : > { %1207 = vrot.lane.b32.xlu1 %v4461_v19, %s2254_s29  ;;  %857 = vrot.lane.b32.xlu0 %v4446_v37, %s2252_s27  ;;  %v4462_v37 = vld [vmem:[#allocation61_spill] sm:$0xff] }
 0x247   : > { %v1674_v29 = vpop.f32.mrf.mxu0  ;;  %v3605_v31 = vpop.permute.xlu2 %1233 }
 0x248   : > { %v1675_v38 = vadd.f32 %v3599_v27, %v1674_v29  ;;  %v1136_v4 = vpop.permute.xlu1 %1135  ;;  %v1040_v13 = vpop.permute.xlu0 %1039  ;;  %v4471_v29 = vld [vmem:[#allocation85_spill] sm:$0xff] }
 0x249   : > { %v1471_v14 = vsel %vm1448_vm8, %v1438_v2, %v1040_v13  ;;  %v498_v2 = vrot.slane %v4471_v29, 2 }
 0x24a   : > { %v1770_v28 = vmax.f32 %v1675_v38, 0.0  ;;  %v1504_v30 = vsel %vm1481_vm9, %v1471_v14, %v1136_v4  ;;  %v4472_v38 = vld [vmem:[#allocation36_spill] sm:$0xff]  ;;  %v492_v4 = vrot.slane %v4470_v61, 1 }
 0x24b   : > { %v1537_v34 = vsel %vm1514_vm10, %v1504_v30, %v1232_v33  ;;  %v4465_v33 = vld [vmem:[#allocation66_spill] sm:$0xff] }
 0x24c   : > { %2137 = vmatmul.msk.f32.gmra.mxu2 %vm1556_vm11, %v1537_v34  ;;  %2148 = vmatmul.msk.f32.vlgmr.msra.gmra.mxu1 %vm1283_vm3, %v1770_v28  ;;  %v1323_v10 = vsel %vm1316_vm4, %v1290_v35, %v4465_v33 }
 0x24d   : > { %1241 = vrot.lane.b32.xlu2 %v4462_v37, %s2254_s29  ;;  %v1356_v39 = vsel %vm1349_vm5, %v1323_v10, %v4466_v15  ;;  %v2230_v10 = vld [vmem:[%s2301_s23 + $0x50] sm:$0xff]  ;;  %v4473_v15 = vld [vmem:[#allocation46_spill] sm:$0xff] }
 0x24e   : > { %1145 = vrot.lane.b32.xlu1 %v4464_v54, %s2255_s30  ;;  %1049 = vrot.lane.b32.xlu0 %v3622_v49, %s2256_s6  ;;  %v1389_v50 = vsel %vm1382_vm6, %v1356_v39, %v3246_v36  ;;  %v1291_v39 = vsel %vm1283_vm3, %v2230_v10, %v4473_v15 }
 0x24f   : > { %v3630_v9 = vpop.permute.xlu2 %1105 }
 0x250   : > { %v1008_v7 = vpop.permute.xlu1 %1007  ;;  %v912_v47 = vpop.permute.xlu0 %911 }
 0x251   : > { %v1422_v20 = vsel %vm1415_vm7, %v1389_v50, %v912_v47  ;;  %v4475_v50 = vld [vmem:[#allocation4_spill] sm:$0xff] }
 0x252   : > { %v1455_v53 = vsel %vm1448_vm8, %v1422_v20, %v1008_v7 }
 0x253   : > { %v1488_v36 = vsel %vm1481_vm9, %v1455_v53, %v1104_v41 }
 0x255   : > { %1113 = vrot.lane.b32.xlu2 %v4467_v12, %s2255_s30 }
 0x256   : > { %1017 = vrot.lane.b32.xlu1 %v3641_v21, %s2256_s6  ;;  %921 = vrot.lane.b32.xlu0 %v4452_v1, %s2253_s28  ;;  %v1340_v1 = vsel %vm1316_vm4, %v1307_v8, %v4469_v0 }
 0x257   : > { %v1725_v3 = vpop.f32.mrf.mxu2  ;;  %v3647_v16 = vpop.permute.xlu2 %947  ;;  %v1373_v57 = vsel %vm1349_vm5, %v1340_v1, %v3177_v32  ;;  %v493_v32 = vrot.slane %v4471_v29, 1  ;;  %v2232_v1 = vld [vmem:[%s2301_s23 + $0x120] sm:$0xff] }
 0x258   : > { %v1726_v58 = vadd.f32 %v3599_v27, %v1725_v3  ;;  %v1200_v62 = vpop.permute.xlu1 %1199  ;;  %v850_v59 = vpop.permute.xlu0 %849 }
 0x259   : > { %v1521_v45 = vsel %vm1514_vm10, %v1488_v36, %v1200_v62  ;;  %v1406_v41 = vsel %vm1382_vm6, %v1373_v57, %v850_v59  ;;  %v4476_v62 = vld [vmem:[#allocation9_spill] sm:$0xff]  ;;  %v2231_v59 = vld [vmem:[%s2301_s23 + $0xc0] sm:$0xff] }
 0x25a   : > { %v1787_v55 = vmax.f32 %v1726_v58, 0.0  ;;  %2121 = vmatmul.msk.f32.gmra.mxu0 %vm1556_vm11, %v1521_v45  ;;  %v4477_v57 = vld [vmem:[#allocation65_spill] sm:$0xff] }
 0x25c   : > { %2165 = vmatmul.msk.f32.vlgmr.msra.gmra.mxu3 %vm1283_vm3, %v1787_v55 }
 0x25d   : > { %955 = vrot.lane.b32.xlu2 %v4453_v51, %s2253_s28  ;;  %v1439_v51 = vsel %vm1415_vm7, %v1406_v41, %v3581_v40  ;;  %v3687_v40 = vsel %vm327_vm0, %v492_v4, %v493_v32  ;;  %v1308_v41 = vsel %vm1283_vm3, %v2232_v1, %v4477_v57  ;;  %v4479_v4 = vld [vmem:[#allocation104_spill] sm:$0xff] }
 0x25e   : > { %1209 = vrot.lane.b32.xlu1 %v4472_v38, %s2254_s29  ;;  %859 = vrot.lane.b32.xlu0 %v4455_v5, %s2252_s27  ;;  %v3680_v5 = vsel %vm408_vm1, %v497_v56, %v498_v2 }
 0x25f   : > { %v1677_v13 = vpop.f32.mrf.mxu0  ;;  %v1236_v14 = vpop.permute.xlu2 %1235 }
 0x260   : > { %v1678_v28 = vadd.f32 %v3599_v27, %v1677_v13  ;;  %v1138_v30 = vpop.permute.xlu1 %1137  ;;  %v1042_v34 = vpop.permute.xlu0 %1041 }
 0x261   : > { %v1472_v52 = vsel %vm1448_vm8, %v1439_v51, %v1042_v34 }
 0x262   : > { %v1771_v24 = vmax.f32 %v1678_v28, 0.0  ;;  %v1505_v35 = vsel %vm1481_vm9, %v1472_v52, %v1138_v30  ;;  %v4480_v28 = vld [vmem:[#allocation44_spill] sm:$0xff] }
 0x263   : > { %v1538_v33 = vsel %vm1514_vm10, %v1505_v35, %v3605_v31  ;;  %v4474_v31 = vld [vmem:[#allocation77_spill] sm:$0xff] }
 0x264   : > { %2138 = vmatmul.msk.f32.gmra.mxu2 %vm1556_vm11, %v1538_v33  ;;  %2149 = vmatmul.msk.f32.gmra.mxu1 %vm1283_vm3, %v1771_v24  ;;  %v1324_v7 = vsel %vm1316_vm4, %v1291_v39, %v4474_v31 }
 0x265   : > { %1243 = vrot.lane.b32.xlu2 %v3680_v5, %s2254_s29  ;;  %v1357_v20 = vsel %vm1349_vm5, %v1324_v7, %v4475_v50  ;;  %v2233_v50 = vld [vmem:[%s2301_s23 + $0x60] sm:$0xff] }
 0x266   : > { %1147 = vrot.lane.b32.xlu1 %v3687_v40, %s2255_s30  ;;  %1051 = vrot.lane.b32.xlu0 %v4470_v61, %s2256_s6  ;;  %v1390_v3 = vsel %vm1382_vm6, %v1357_v20, %v3244_v48  ;;  %v4481_v20 = vld [vmem:[#allocation29_spill] sm:$0xff] }
 0x267   : > { %v3702_v47 = vpop.permute.xlu2 %1107 }
 0x268   : > { %v1010_v53 = vpop.permute.xlu1 %1009  ;;  %v914_v12 = vpop.permute.xlu0 %913 }
 0x269   : > { %v1423_v36 = vsel %vm1415_vm7, %v1390_v3, %v914_v12  ;;  %v4483_v12 = vld [vmem:[#allocation97_spill] sm:$0xff] }
 0x26a   : > { %v1456_v58 = vsel %vm1448_vm8, %v1423_v36, %v1010_v53 }
 0x26b   : > { %v1489_v48 = vsel %vm1481_vm9, %v1456_v58, %v3630_v9  ;;  %v275_v9 = vld [vmem:[%s2301_s23 + $0x190] sm:$0x3] }
 0x26c   : > { %v500_v30 = vrot.slane %v275_v9, 2  ;;  %v495_v52 = vrot.slane %v275_v9, 1 }
 0x26d   : > { %1115 = vrot.lane.b32.xlu2 %v4476_v62, %s2255_s30  ;;  %v4484_v62 = vld [vmem:[#allocation106_spill] sm:$0xff] }
 0x26e   : > { %1019 = vrot.lane.b32.xlu1 %v2231_v59, %s2256_s6  ;;  %923 = vrot.lane.b32.xlu0 %v4461_v19, %s2253_s28  ;;  %v4478_v19 = vld [vmem:[#allocation81_spill] sm:$0xff] }
 0x26f   : > { %v1728_v45 = vpop.f32.mrf.mxu2  ;;  %v3716_v46 = vpop.permute.xlu2 %949  ;;  %v1341_v56 = vsel %vm1316_vm4, %v1308_v41, %v4478_v19  ;;  %v2235_v19 = vld [vmem:[%s2301_s23 + $0x128] sm:$0xff] }
 0x270   : > { %v1729_v11 = vadd.f32 %v3599_v27, %v1728_v45  ;;  %v1202_v8 = vpop.permute.xlu1 %1201  ;;  %v852_v55 = vpop.permute.xlu0 %851  ;;  %v1374_v13 = vsel %vm1349_vm5, %v1341_v56, %v4479_v4  ;;  %v4486_v56 = vld [vmem:[#allocation64_spill] sm:$0xff] }
 0x271   : > { %v1522_v0 = vsel %vm1514_vm10, %v1489_v48, %v1202_v8  ;;  %v1407_v51 = vsel %vm1382_vm6, %v1374_v13, %v852_v55  ;;  %v1309_v4 = vsel %vm1283_vm3, %v2235_v19, %v4486_v56 }
 0x272   : > { %v1788_v61 = vmax.f32 %v1729_v11, 0.0  ;;  %2122 = vmatmul.msk.f32.gmra.mxu0 %vm1556_vm11, %v1522_v0  ;;  %v1440_v35 = vsel %vm1415_vm7, %v1407_v51, %v3647_v16  ;;  %v3755_v16 = vsel %vm327_vm0, %v493_v32, %v495_v52  ;;  %v4482_v32 = vld [vmem:[#allocation76_spill] sm:$0xff]  ;;  %v2234_v11 = vld [vmem:[%s2301_s23 + $0xc8] sm:$0xff] }
 0x273   : > { %v4488_v51 = vld [vmem:[#allocation100_spill] sm:$0xff] }
 0x274   : > { %2166 = vmatmul.msk.f32.gmra.mxu3 %vm1283_vm3, %v1788_v61 }
 0x275   : > { %957 = vrot.lane.b32.xlu2 %v4462_v37, %s2253_s28 }
 0x276   : > { %1211 = vrot.lane.b32.xlu1 %v4480_v28, %s2254_s29  ;;  %861 = vrot.lane.b32.xlu0 %v4464_v54, %s2252_s27  ;;  %v3749_v54 = vsel %vm408_vm1, %v498_v2, %v500_v30  ;;  %v1292_v2 = vsel %vm1283_vm3, %v2233_v50, %v4481_v20 }
 0x277   : > { %v1680_v34 = vpop.f32.mrf.mxu0  ;;  %v3739_v24 = vpop.permute.xlu2 %1237 }
 0x278   : > { %v1681_v33 = vadd.f32 %v3599_v27, %v1680_v34  ;;  %v1140_v10 = vpop.permute.xlu1 %1139  ;;  %v1044_v15 = vpop.permute.xlu0 %1043  ;;  %v3801_v34 = vld [vmem:[%s2301_s23 + $0x1a0] sm:$0xff] }
 0x279   : > { %v1473_v37 = vsel %vm1448_vm8, %v1440_v35, %v1044_v15  ;;  %v4489_v35 = vld [vmem:[#allocation43_spill] sm:$0xff] }
 0x27a   : > { %v1772_v39 = vmax.f32 %v1681_v33, 0.0  ;;  %v1506_v31 = vsel %vm1481_vm9, %v1473_v37, %v1140_v10  ;;  %v511_v10 = vrot.slane %v3801_v34, 2 }
 0x27b   : > { %v1539_v7 = vsel %vm1514_vm10, %v1506_v31, %v1236_v14  ;;  %v1325_v14 = vsel %vm1316_vm4, %v1292_v2, %v4482_v32 }
 0x27c   : > { %2139 = vmatmul.msk.f32.gmra.mxu2 %vm1556_vm11, %v1539_v7  ;;  %2150 = vmatmul.msk.f32.gmra.mxu1 %vm1283_vm3, %v1772_v39  ;;  %v1358_v3 = vsel %vm1349_vm5, %v1325_v14, %v4483_v12  ;;  %v506_v39 = vrot.slane %v3801_v34, 1 }
 0x27d   : > { %1245 = vrot.lane.b32.xlu2 %v3749_v54, %s2254_s29  ;;  %v1391_v59 = vsel %vm1382_vm6, %v1358_v3, %v4484_v62  ;;  %v4490_v3 = vld [vmem:[#allocation51_spill] sm:$0xff] }
 0x27e   : > { %1149 = vrot.lane.b32.xlu1 %v3755_v16, %s2255_s30  ;;  %1053 = vrot.lane.b32.xlu0 %v4471_v29, %s2256_s6  ;;  %v4485_v29 = vld [vmem:[#allocation8_spill] sm:$0xff] }
 0x27f   : > { %v3770_v53 = vpop.permute.xlu2 %1109 }
 0x280   : > { %v1012_v36 = vpop.permute.xlu1 %1011  ;;  %v916_v58 = vpop.permute.xlu0 %915 }
 0x281   : > { %v1424_v45 = vsel %vm1415_vm7, %v1391_v59, %v916_v58  ;;  %v4492_v59 = vld [vmem:[#allocation11_spill] sm:$0xff] }
 0x282   : > { %v1457_v48 = vsel %vm1448_vm8, %v1424_v45, %v1012_v36  ;;  %v1293_v36 = vsel %vm1283_vm3, %v3321_v43, %v4490_v3 }
 0x283   : > { %v1490_v0 = vsel %vm1481_vm9, %v1457_v48, %v3702_v47  ;;  %v276_v47 = vld [vmem:[%s2301_s23 + $0x198] sm:$0xff] }
 0x284   : > { %v510_v33 = vrot.slane %v276_v47, 2  ;;  %v505_v37 = vrot.slane %v276_v47, 1 }
 0x285   : > { %1117 = vrot.lane.b32.xlu2 %v4485_v29, %s2255_s30 }
 0x286   : > { %1021 = vrot.lane.b32.xlu1 %v2234_v11, %s2256_s6  ;;  %925 = vrot.lane.b32.xlu0 %v4472_v38, %s2253_s28  ;;  %v4487_v38 = vld [vmem:[#allocation92_spill] sm:$0xff]  ;;  %v512_v14 = vsel %vm408_vm1, %v510_v33, %v511_v10  ;;  %v4493_v11 = vld [vmem:[#allocation111_spill] sm:$0xff]  ;;  %v4497_v33 = vld [vmem:[#allocation105_spill] sm:$0xff] }
 0x287   : > { %v1731_v8 = vpop.f32.mrf.mxu2  ;;  %v3784_v55 = vpop.permute.xlu2 %951  ;;  %v1342_v9 = vsel %vm1316_vm4, %v1309_v4, %v4487_v38 }
 0x288   : > { %v1732_v1 = vadd.f32 %v3599_v27, %v1731_v8  ;;  %v1204_v57 = vpop.permute.xlu1 %1203  ;;  %v854_v41 = vpop.permute.xlu0 %853  ;;  %v1375_v30 = vsel %vm1349_vm5, %v1342_v9, %v4488_v51  ;;  %v2237_v9 = vld [vmem:[%s2301_s23 + $0x138] sm:$0xff] }
 0x289   : > { %v1523_v61 = vsel %vm1514_vm10, %v1490_v0, %v1204_v57  ;;  %v1408_v52 = vsel %vm1382_vm6, %v1375_v30, %v854_v41  ;;  %v2236_v57 = vld [vmem:[%s2301_s23 + $0xd8] sm:$0xff] }
 0x28a   : > { %v1789_v13 = vmax.f32 %v1732_v1, 0.0  ;;  %2123 = vmatmul.msk.f32.gmra.mxu0 %vm1556_vm11, %v1523_v61  ;;  %v1441_v7 = vsel %vm1415_vm7, %v1408_v52, %v3716_v46  ;;  %v507_v46 = vsel %vm327_vm0, %v505_v37, %v506_v39  ;;  %v4494_v1 = vld [vmem:[#allocation13_spill] sm:$0xff] }
 0x28b   : > { %v4495_v51 = vld [vmem:[#allocation57_spill] sm:$0xff] }
 0x28c   : > { %2167 = vmatmul.msk.f32.gmra.mxu3 %vm1283_vm3, %v1789_v13  ;;  %v1310_v30 = vsel %vm1283_vm3, %v2237_v9, %v4495_v51 }
 0x28d   : > { %959 = vrot.lane.b32.xlu2 %v3680_v5, %s2253_s28 }
 0x28e   : > { %1213 = vrot.lane.b32.xlu1 %v4489_v35, %s2254_s29  ;;  %863 = vrot.lane.b32.xlu0 %v3687_v40, %s2252_s27 }
 0x28f   : > { %v1683_v15 = vpop.f32.mrf.mxu0  ;;  %v1240_v31 = vpop.permute.xlu2 %1239 }
 0x290   : > { %v1684_v50 = vadd.f32 %v3599_v27, %v1683_v15  ;;  %v1142_v5 = vpop.permute.xlu1 %1141  ;;  %v1046_v20 = vpop.permute.xlu0 %1045 }
 0x291   : > { %v1474_v2 = vsel %vm1448_vm8, %v1441_v7, %v1046_v20  ;;  %v4498_v7 = vld [vmem:[#allocation42_spill] sm:$0xff] }
 0x292   : > { %v1773_v32 = vmax.f32 %v1684_v50, 0.0  ;;  %v1507_v40 = vsel %vm1481_vm9, %v1474_v2, %v1142_v5 }
 0x293   : > { %v1540_v12 = vsel %vm1514_vm10, %v1507_v40, %v3739_v24  ;;  %v4491_v24 = vld [vmem:[#allocation69_spill] sm:$0xff] }
 0x294   : > { %2140 = vmatmul.msk.f32.gmra.mxu2 %vm1556_vm11, %v1540_v12  ;;  %2151 = vmatmul.msk.f32.gmra.mxu1 %vm1283_vm3, %v1773_v32  ;;  %v1326_v58 = vsel %vm1316_vm4, %v1293_v36, %v4491_v24 }
 0x295   : > { %1247 = vrot.lane.b32.xlu2 %v512_v14, %s2254_s29  ;;  %v1359_v45 = vsel %vm1349_vm5, %v1326_v58, %v4492_v59  ;;  %v4501_v59 = vld [vmem:[#allocation7_spill] sm:$0xff] }
 0x296   : > { %1151 = vrot.lane.b32.xlu1 %v507_v46, %s2255_s30  ;;  %1055 = vrot.lane.b32.xlu0 %v276_v47, %s2256_s6  ;;  %v1392_v8 = vsel %vm1382_vm6, %v1359_v45, %v4493_v11 }
 0x297   : > { %v3835_v62 = vpop.permute.xlu2 %1111 }
 0x298   : > { %v1014_v48 = vpop.permute.xlu1 %1013  ;;  %v918_v29 = vpop.permute.xlu0 %917 }
 0x299   : > { %v1425_v43 = vsel %vm1415_vm7, %v1392_v8, %v918_v29  ;;  %v4502_v29 = vld [vmem:[#allocation110_spill] sm:$0xff] }
 0x29a   : > { %v1458_v0 = vsel %vm1448_vm8, %v1425_v43, %v1014_v48 }
 0x29b   : > { %v1491_v19 = vsel %vm1481_vm9, %v1458_v0, %v3770_v53  ;;  %v278_v53 = vld [vmem:[%s2301_s23 + $0x1a8] sm:$0x3] }
 0x29c   : > { %v513_v50 = vrot.slane %v278_v53, 2  ;;  %v508_v20 = vrot.slane %v278_v53, 1 }
 0x29d   : > { %1119 = vrot.lane.b32.xlu2 %v4494_v1, %s2255_s30 }
 0x29e   : > { %1023 = vrot.lane.b32.xlu1 %v2236_v57, %s2256_s6  ;;  %927 = vrot.lane.b32.xlu0 %v4480_v28, %s2253_s28  ;;  %v4496_v28 = vld [vmem:[#allocation91_spill] sm:$0xff]  ;;  %v509_v24 = vsel %vm327_vm0, %v506_v39, %v508_v20 }
 0x29f   : > { %v1734_v41 = vpop.f32.mrf.mxu2  ;;  %v3849_v61 = vpop.permute.xlu2 %953  ;;  %v1343_v52 = vsel %vm1316_vm4, %v1310_v30, %v4496_v28  ;;  %v4506_v30 = vld [vmem:[#allocation15_spill] sm:$0xff]  ;;  %v4507_v28 = vld [vmem:[#allocation48_spill] sm:$0xff] }
 0x2a0   : > { %v1735_v56 = vadd.f32 %v3599_v27, %v1734_v41  ;;  %v1206_v4 = vpop.permute.xlu1 %1205  ;;  %v856_v13 = vpop.permute.xlu0 %855  ;;  %v1376_v15 = vsel %vm1349_vm5, %v1343_v52, %v4497_v33 }
 0x2a1   : > { %v1524_v38 = vsel %vm1514_vm10, %v1491_v19, %v1206_v4  ;;  %v1409_v37 = vsel %vm1382_vm6, %v1376_v15, %v856_v13  ;;  %v2238_v4 = vld [vmem:[%s2301_s23 + $0x140] sm:$0xff]  ;;  %v4504_v13 = vld [vmem:[#allocation68_spill] sm:$0xff] }
 0x2a2   : > { %v1790_v47 = vmax.f32 %v1735_v56, 0.0  ;;  %2124 = vmatmul.msk.f32.gmra.mxu0 %vm1556_vm11, %v1524_v38  ;;  %v1442_v32 = vsel %vm1415_vm7, %v1409_v37, %v3784_v55  ;;  %v4499_v55 = vld [vmem:[#allocation50_spill] sm:$0xff]  ;;  %v1311_v38 = vsel %vm1283_vm3, %v2238_v4, %v4504_v13 }
 0x2a3   : > { %v1294_v58 = vsel %vm1283_vm3, %v3369_v42, %v4499_v55 }
 0x2a4   : > { %2168 = vmatmul.msk.f32.gmra.mxu3 %vm1283_vm3, %v1790_v47 }
 0x2a5   : > { %961 = vrot.lane.b32.xlu2 %v3749_v54, %s2253_s28 }
 0x2a6   : > { %1215 = vrot.lane.b32.xlu1 %v4498_v7, %s2254_s29  ;;  %865 = vrot.lane.b32.xlu0 %v3755_v16, %s2252_s27  ;;  %v514_v16 = vsel %vm408_vm1, %v511_v10, %v513_v50  ;;  %v4500_v10 = vld [vmem:[#allocation80_spill] sm:$0xff] }
 0x2a7   : > { %v1686_v5 = vpop.f32.mrf.mxu0  ;;  %v1242_v2 = vpop.permute.xlu2 %1241 }
 0x2a8   : > { %v1687_v40 = vadd.f32 %v3599_v27, %v1686_v5  ;;  %v1144_v14 = vpop.permute.xlu1 %1143  ;;  %v1048_v12 = vpop.permute.xlu0 %1047 }
 0x2a9   : > { %v1475_v46 = vsel %vm1448_vm8, %v1442_v32, %v1048_v12  ;;  %v4509_v12 = vld [vmem:[#allocation79_spill] sm:$0xff] }
 0x2aa   : > { %v1774_v54 = vmax.f32 %v1687_v40, 0.0  ;;  %v1508_v3 = vsel %vm1481_vm9, %v1475_v46, %v1144_v14  ;;  %v4508_v40 = vld [vmem:[#allocation33_spill] sm:$0xff]  ;;  %v3938_v14 = vld [vmem:[%s4211_s4] ss:$0 sm:$0xff] }
 0x2ab   : > { %v1541_v36 = vsel %vm1514_vm10, %v1508_v3, %v1240_v31  ;;  %v1327_v31 = vsel %vm1316_vm4, %v1294_v58, %v4500_v10 }
 0x2ac   : > { %2141 = vmatmul.msk.f32.gmra.mxu2 %vm1556_vm11, %v1541_v36  ;;  %2152 = vmatmul.msk.f32.gmra.mxu1 %vm1283_vm3, %v1774_v54  ;;  %v1360_v39 = vsel %vm1349_vm5, %v1327_v31, %v4501_v59  ;;  %v4510_v54 = vld [vmem:[#allocation99_spill] sm:$0xff]  ;;  %v4511_v36 = vld [vmem:[#allocation109_spill] sm:$0xff] }
 0x2ad   : > { %1249 = vrot.lane.b32.xlu2 %v514_v16, %s2254_s29  ;;  %v1393_v11 = vsel %vm1382_vm6, %v1360_v39, %v4502_v29 }
 0x2ae   : > { %1057 = vrot.lane.b32.xlu0 %v3801_v34, %s2256_s6  ;;  %1153 = vrot.lane.b32.xlu1 %v509_v24, %s2255_s30  ;;  %v4503_v34 = vld [vmem:[#allocation12_spill] sm:$0xff] }
 0x2af   : > { %v1114_v8 = vpop.permute.xlu2 %1113 }
 0x2b0   : > { %v1016_v45 = vpop.permute.xlu1 %1015  ;;  %v920_v48 = vpop.permute.xlu0 %919 }
 0x2b1   : > { %v1426_v42 = vsel %vm1415_vm7, %v1393_v11, %v920_v48 }
 0x2b2   : > { %v1459_v43 = vsel %vm1448_vm8, %v1426_v42, %v1016_v45  ;;  %v2239_v42 = vld [vmem:[%s2301_s23 + $0x150] sm:$0xff] }
 0x2b3   : > { %v1492_v1 = vsel %vm1481_vm9, %v1459_v43, %v3835_v62  ;;  %v4512_v43 = vld [vmem:[#allocation67_spill] sm:$0xff] }
 0x2b5   : > { %1121 = vrot.lane.b32.xlu2 %v4503_v34, %s2255_s30  ;;  %v1312_v34 = vsel %vm1283_vm3, %v2239_v42, %v4512_v43 }
 0x2b6   : > { %929 = vrot.lane.b32.xlu0 %v4489_v35, %s2253_s28  ;;  %1025 = vrot.lane.b32.xlu1 %v3426_v23, %s2256_s6  ;;  %v4505_v35 = vld [vmem:[#allocation84_spill] sm:$0xff] }
 0x2b7   : > { %v1737_v0 = vpop.f32.mrf.mxu2  ;;  %v1344_v23 = vsel %vm1316_vm4, %v1311_v38, %v4505_v35  ;;  %v956_v51 = vpop.permute.xlu2 %955 }
 0x2b8   : > { %v1738_v57 = vadd.f32 %v3599_v27, %v1737_v0  ;;  %v1208_v41 = vpop.permute.xlu1 %1207  ;;  %v858_v19 = vpop.permute.xlu0 %857  ;;  %v1377_v62 = vsel %vm1349_vm5, %v1344_v23, %v4506_v30 }
 0x2b9   : > { %v1525_v56 = vsel %vm1514_vm10, %v1492_v1, %v1208_v41  ;;  %v1410_v47 = vsel %vm1382_vm6, %v1377_v62, %v858_v19  ;;  %v4513_v1 = vld [vmem:[#allocation93_spill] sm:$0xff]  ;;  %v4514_v41 = vld [vmem:[#allocation16_spill] sm:$0xff] }
 0x2ba   : > { %v1791_v9 = vmax.f32 %v1738_v57, 0.0  ;;  %2125 = vmatmul.msk.f32.gmra.mxu0 %vm1556_vm11, %v1525_v56  ;;  %v1443_v33 = vsel %vm1415_vm7, %v1410_v47, %v3849_v61  ;;  %v1295_v61 = vsel %vm1283_vm3, %v3417_v44, %v4508_v40  ;;  %v1345_v57 = vsel %vm1316_vm4, %v1312_v34, %v4513_v1  ;;  %v4521_v1 = vld [vmem:[#allocation54_spill] sm:$0xff] }
 0x2bb   : > { %v1328_v46 = vsel %vm1316_vm4, %v1295_v61, %v4509_v12  ;;  %v1378_v19 = vsel %vm1349_vm5, %v1345_v57, %v4514_v41  ;;  %v1297_v57 = vsel %vm1283_vm3, %v3519_v60, %v4521_v1  ;;  %v4522_v41 = vld [vmem:[#allocation83_spill] sm:$0xff] }
 0x2bc   : > { %2169 = vmatmul.msk.f32.gmra.mxu3 %vm1283_vm3, %v1791_v9 }
 0x2be   : > { %1217 = vrot.lane.b32.xlu0 %v4507_v28, %s2254_s29  ;;  %v4515_v28 = vld [vmem:[#allocation55_spill] sm:$0xff] }
 0x2bf   : > { %v1689_v52 = vpop.f32.mrf.mxu0  ;;  %v1244_v32 = vpop.permute.xlu2 %1243 }
 0x2c0   : > { %v1690_v15 = vadd.f32 %v3599_v27, %v1689_v52  ;;  %v1146_v53 = vpop.permute.xlu1 %1145  ;;  %v1050_v37 = vpop.permute.xlu0 %1049  ;;  %v4516_v52 = vld [vmem:[#allocation72_spill] sm:$0xff] }
 0x2c1   : > { %v1476_v7 = vsel %vm1448_vm8, %v1443_v33, %v1050_v37 }
 0x2c2   : > { %v1775_v50 = vmax.f32 %v1690_v15, 0.0  ;;  %v1509_v5 = vsel %vm1481_vm9, %v1476_v7, %v1146_v53  ;;  %v4517_v53 = vld [vmem:[#allocation98_spill] sm:$0xff] }
 0x2c3   : > { %v1542_v20 = vsel %vm1514_vm10, %v1509_v5, %v1242_v2  ;;  %v1361_v2 = vsel %vm1349_vm5, %v1328_v46, %v4510_v54 }
 0x2c4   : > { %2142 = vmatmul.msk.f32.gmra.mxu2 %vm1556_vm11, %v1542_v20  ;;  %2153 = vmatmul.msk.f32.gmra.mxu1 %vm1283_vm3, %v1775_v50  ;;  %v1394_v24 = vsel %vm1382_vm6, %v1361_v2, %v4511_v36  ;;  %v4518_v36 = vld [vmem:[#allocation60_spill] sm:$0xff] }
 0x2c7   : > { %v1116_v59 = vpop.permute.xlu2 %1115 }
 0x2c8   : > { %v1018_v3 = vpop.permute.xlu1 %1017  ;;  %v922_v16 = vpop.permute.xlu0 %921 }
 0x2c9   : > { %v1923_v44 = vpop.f32.mrf.mxu1  ;;  %v1427_v55 = vsel %vm1415_vm7, %v1394_v24, %v922_v16  ;;  %v1313_v24 = vsel %vm1283_vm3, %v3504_v25, %v4518_v36 }
 0x2ca   : > { %v1924_v58 = vadd.f32 %v3938_v14, %v1923_v44  ;;  %v1460_v10 = vsel %vm1448_vm8, %v1427_v55, %v1018_v3  ;;  %v4519_v55 = vld [vmem:[#allocation2_spill] sm:$0xff] }
 0x2cb   : > { %v1493_v39 = vsel %vm1481_vm9, %v1460_v10, %v1114_v8  ;;  %v4520_v10 = vld [vmem:[#allocation108_spill] sm:$0xff] }
 0x2cc   : > { %2019 = vst.msk [vmem:[%s3949_s19] sm:$0xff] %vm1514_vm10, %v1924_v58  ;;  %v1346_v58 = vsel %vm1316_vm4, %v1313_v24, %v4519_v55  ;;  %v4528_v55 = vld [vmem:[#allocation39_spill] sm:$0xff] }
 0x2cf   : > { %v1740_v31 = vpop.f32.mrf.mxu2  ;;  %v958_v23 = vpop.permute.xlu2 %957 }
 0x2d0   : > { %v1741_v45 = vadd.f32 %v3599_v27, %v1740_v31  ;;  %v1210_v48 = vpop.permute.xlu1 %1209  ;;  %v860_v29 = vpop.permute.xlu0 %859  ;;  %v1379_v31 = vsel %vm1349_vm5, %v1346_v58, %v4520_v10  ;;  %v1298_v58 = vsel %vm1283_vm3, %v3575_v63, %v4528_v55  ;;  %v4529_v10 = vld [vmem:[#allocation82_spill] sm:$0xff] }
 0x2d1   : > { %v1526_v11 = vsel %vm1514_vm10, %v1493_v39, %v1210_v48  ;;  %v1411_v8 = vsel %vm1382_vm6, %v1378_v19, %v860_v29  ;;  %v1330_v19 = vsel %vm1316_vm4, %v1297_v57, %v4522_v41 }
 0x2d2   : > { %v1792_v0 = vmax.f32 %v1741_v45, 0.0  ;;  %2126 = vmatmul.msk.f32.gmra.mxu0 %vm1556_vm11, %v1526_v11  ;;  %v1444_v4 = vsel %vm1415_vm7, %v1411_v8, %v956_v51  ;;  %v1296_v51 = vsel %vm1283_vm3, %v3468_v17, %v4515_v28 }
 0x2d3   : > { %v1329_v33 = vsel %vm1316_vm4, %v1296_v51, %v4516_v52 }
 0x2d4   : > { %2170 = vmatmul.msk.f32.gmra.mxu3 %vm1283_vm3, %v1792_v0  ;;  %v1362_v37 = vsel %vm1349_vm5, %v1329_v33, %v4517_v53 }
 0x2d5   : > { %v1395_v20 = vsel %vm1382_vm6, %v1362_v37, %v3272_v26 }
 0x2d7   : > { %v1692_v56 = vpop.f32.mrf.mxu0  ;;  %v1246_v61 = vpop.permute.xlu2 %1245 }
 0x2d8   : > { %v1693_v13 = vadd.f32 %v3599_v27, %v1692_v56  ;;  %v1148_v38 = vpop.permute.xlu1 %1147  ;;  %v1052_v9 = vpop.permute.xlu0 %1051 }
 0x2d9   : > { %v1477_v35 = vsel %vm1448_vm8, %v1444_v4, %v1052_v9  ;;  %v4523_v4 = vld [vmem:[#allocation94_spill] sm:$0xff] }
 0x2da   : > { %v1776_v30 = vmax.f32 %v1693_v13, 0.0  ;;  %v1510_v62 = vsel %vm1481_vm9, %v1477_v35, %v1148_v38  ;;  %v1363_v13 = vsel %vm1349_vm5, %v1330_v19, %v4523_v4 }
 0x2db   : > { %v1543_v47 = vsel %vm1514_vm10, %v1510_v62, %v1244_v32 }
 0x2dc   : > { %2143 = vmatmul.msk.f32.gmra.mxu2 %vm1556_vm11, %v1543_v47  ;;  %2154 = vmatmul.msk.f32.gmra.mxu1 %vm1283_vm3, %v1776_v30 }
 0x2df   : > { %v1974_v15 = vpop.f32.mrf.mxu3  ;;  %v1118_v39 = vpop.permute.xlu2 %1117 }
 0x2e0   : > { %v1975_v7 = vadd.f32 %v3938_v14, %v1974_v15  ;;  %v1020_v50 = vpop.permute.xlu1 %1019  ;;  %v924_v5 = vpop.permute.xlu0 %923 }
 0x2e1   : > { %v1926_v32 = vpop.f32.mrf.mxu1  ;;  %v1428_v40 = vsel %vm1415_vm7, %v1395_v20, %v924_v5 }
 0x2e2   : > { %2036 = vst.msk [vmem:[%s3949_s19 + $0x88] sm:$0xff] %vm1514_vm10, %v1975_v7  ;;  %v1927_v17 = vadd.f32 %v3938_v14, %v1926_v32  ;;  %v1461_v12 = vsel %vm1448_vm8, %v1428_v40, %v1020_v50  ;;  %v4525_v50 = vld [vmem:[#allocation71_spill] sm:$0xff] }
 0x2e3   : > { %v1494_v54 = vsel %vm1481_vm9, %v1461_v12, %v1116_v59  ;;  %v1314_v5 = vsel %vm1283_vm3, %v3560_v6, %v4525_v50  ;;  %v4526_v32 = vld [vmem:[#allocation87_spill] sm:$0xff]  ;;  %v4535_v50 = vld [vmem:[#allocation58_spill] sm:$0xff] }
 0x2e4   : > { %2020 = vst.msk [vmem:[%s3949_s19 + $0x8] sm:$0xff] %vm1514_vm10, %v1927_v17  ;;  %v1347_v40 = vsel %vm1316_vm4, %v1314_v5, %v4526_v32  ;;  %v4527_v17 = vld [vmem:[#allocation107_spill] sm:$0xff]  ;;  %v1299_v5 = vsel %vm1283_vm3, %v3641_v21, %v4535_v50 }
 0x2e7   : > { %v1743_v46 = vpop.f32.mrf.mxu2  ;;  %v960_v56 = vpop.permute.xlu2 %959 }
 0x2e8   : > { %v1744_v2 = vadd.f32 %v3599_v27, %v1743_v46  ;;  %v1212_v3 = vpop.permute.xlu1 %1211  ;;  %v862_v16 = vpop.permute.xlu0 %861 }
 0x2e9   : > { %v1527_v26 = vsel %vm1514_vm10, %v1494_v54, %v1212_v3  ;;  %v1412_v59 = vsel %vm1382_vm6, %v1379_v31, %v862_v16  ;;  %v1331_v31 = vsel %vm1316_vm4, %v1298_v58, %v4529_v10 }
 0x2ea   : > { %v1793_v44 = vmax.f32 %v1744_v2, 0.0  ;;  %2127 = vmatmul.msk.f32.gmra.mxu0 %vm1556_vm11, %v1527_v26  ;;  %v1445_v48 = vsel %vm1415_vm7, %v1412_v59, %v958_v23  ;;  %v4524_v23 = vld [vmem:[#allocation52_spill] sm:$0xff] }
 0x2eb   : > { %v1396_v30 = vsel %vm1382_vm6, %v1363_v13, %v4524_v23  ;;  %v4532_v13 = vld [vmem:[#allocation70_spill] sm:$0xff] }
 0x2ec   : > { %2171 = vmatmul.msk.f32.gmra.mxu3 %vm1283_vm3, %v1793_v44 }
 0x2ef   : > { %v1695_v45 = vpop.f32.mrf.mxu0  ;;  %v1248_v7 = vpop.permute.xlu2 %1247 }
 0x2f0   : > { %v1696_v29 = vadd.f32 %v3599_v27, %v1695_v45  ;;  %v1150_v25 = vpop.permute.xlu1 %1149  ;;  %v1054_v11 = vpop.permute.xlu0 %1053 }
 0x2f1   : > { %v1478_v42 = vsel %vm1448_vm8, %v1445_v48, %v1054_v11  ;;  %v4531_v11 = vld [vmem:[#allocation14_spill] sm:$0xff] }
 0x2f2   : > { %v1777_v43 = vmax.f32 %v1696_v29, 0.0  ;;  %v1511_v34 = vsel %vm1481_vm9, %v1478_v42, %v1150_v25 }
 0x2f3   : > { %v1544_v0 = vsel %vm1514_vm10, %v1511_v34, %v1246_v61  ;;  %v1380_v61 = vsel %vm1349_vm5, %v1347_v40, %v4527_v17  ;;  %v4537_v17 = vld [vmem:[#allocation101_spill] sm:$0xff] }
 0x2f4   : > { %2144 = vmatmul.msk.f32.gmra.mxu2 %vm1556_vm11, %v1544_v0  ;;  %2155 = vmatmul.msk.f32.gmra.mxu1 %vm1283_vm3, %v1777_v43 }
 0x2f7   : > { %v1977_v8 = vpop.f32.mrf.mxu3  ;;  %v1120_v44 = vpop.permute.xlu2 %1119 }
 0x2f8   : > { %v1978_v38 = vadd.f32 %v3938_v14, %v1977_v8  ;;  %v1022_v9 = vpop.permute.xlu1 %1021  ;;  %v926_v35 = vpop.permute.xlu0 %925 }
 0x2f9   : > { %v1929_v62 = vpop.f32.mrf.mxu1  ;;  %v1429_v60 = vsel %vm1415_vm7, %v1396_v30, %v926_v35  ;;  %v4533_v35 = vld [vmem:[#allocation3_spill] sm:$0xff] }
 0x2fa   : > { %2037 = vst.msk [vmem:[%s3949_s19 + $0x90] sm:$0xff] %vm1514_vm10, %v1978_v38  ;;  %v1930_v47 = vadd.f32 %v3938_v14, %v1929_v62  ;;  %v1462_v28 = vsel %vm1448_vm8, %v1429_v60, %v1022_v9  ;;  %v1315_v38 = vsel %vm1283_vm3, %v3622_v49, %v4532_v13  ;;  %v4534_v30 = vld [vmem:[#allocation103_spill] sm:$0xff] }
 0x2fb   : > { %v1495_v52 = vsel %vm1481_vm9, %v1462_v28, %v1118_v39  ;;  %v4530_v39 = vld [vmem:[#allocation102_spill] sm:$0xff]  ;;  %v1348_v23 = vsel %vm1316_vm4, %v1315_v38, %v4533_v35 }
 0x2fc   : > { %2021 = vst.msk [vmem:[%s3949_s19 + $0x10] sm:$0xff] %vm1514_vm10, %v1930_v47  ;;  %v1364_v45 = vsel %vm1349_vm5, %v1331_v31, %v4530_v39  ;;  %v1381_v62 = vsel %vm1349_vm5, %v1348_v23, %v4534_v30 }
 0x2fd   : > { %v1397_v42 = vsel %vm1382_vm6, %v1364_v45, %v4531_v11 }
 0x2ff   : > { %v1746_v51 = vpop.f32.mrf.mxu2  ;;  %v962_v1 = vpop.permute.xlu2 %961 }
 0x300   : > { %v1747_v33 = vadd.f32 %v3599_v27, %v1746_v51  ;;  %v1214_v15 = vpop.permute.xlu1 %1213  ;;  %v864_v53 = vpop.permute.xlu0 %863 }
 0x301   : > { %v1528_v37 = vsel %vm1514_vm10, %v1495_v52, %v1214_v15  ;;  %v1413_v12 = vsel %vm1382_vm6, %v1380_v61, %v864_v53 }
 0x302   : > { %v1794_v20 = vmax.f32 %v1747_v33, 0.0  ;;  %2128 = vmatmul.msk.f32.gmra.mxu0 %vm1556_vm11, %v1528_v37  ;;  %v1446_v54 = vsel %vm1415_vm7, %v1413_v12, %v960_v56 }
 0x304   : > { %2172 = vmatmul.msk.f32.gmra.mxu3 %vm1283_vm3, %v1794_v20  ;;  %v4536_v20 = vld [vmem:[#allocation73_spill] sm:$0xff] }
 0x305   : > { %v1332_v32 = vsel %vm1316_vm4, %v1299_v5, %v4536_v20 }
 0x306   : > { %v1365_v61 = vsel %vm1349_vm5, %v1332_v32, %v4537_v17 }
 0x307   : > { %v1698_v46 = vpop.f32.mrf.mxu0  ;;  %v1250_v28 = vpop.permute.xlu2 %1249 }
 0x308   : > { %v1699_v2 = vadd.f32 %v3599_v27, %v1698_v46  ;;  %v1152_v3 = vpop.permute.xlu1 %1151  ;;  %v1056_v6 = vpop.permute.xlu0 %1055 }
 0x309   : > { %v1479_v16 = vsel %vm1448_vm8, %v1446_v54, %v1056_v6  ;;  %v1398_v54 = vsel %vm1382_vm6, %v1365_v61, %v3280_v18 }
 0x30a   : > { %v1778_v26 = vmax.f32 %v1699_v2, 0.0  ;;  %v1512_v36 = vsel %vm1481_vm9, %v1479_v16, %v1152_v3 }
 0x30b   : > { %v1545_v24 = vsel %vm1514_vm10, %v1512_v36, %v1248_v7 }
 0x30c   : > { %2145 = vmatmul.msk.f32.gmra.mxu2 %vm1556_vm11, %v1545_v24  ;;  %2156 = vmatmul.msk.f32.gmra.mxu1 %vm1283_vm3, %v1778_v26 }
 0x30f   : > { %v1980_v59 = vpop.f32.mrf.mxu3  ;;  %v1122_v26 = vpop.permute.xlu2 %1121 }
 0x310   : > { %v1981_v48 = vadd.f32 %v3938_v14, %v1980_v59  ;;  %v1024_v29 = vpop.permute.xlu1 %1023  ;;  %v928_v25 = vpop.permute.xlu0 %927 }
 0x311   : > { %v1932_v43 = vpop.f32.mrf.mxu1  ;;  %v1430_v34 = vsel %vm1415_vm7, %v1397_v42, %v928_v25 }
 0x312   : > { %2038 = vst.msk [vmem:[%s3949_s19 + $0x98] sm:$0xff] %vm1514_vm10, %v1981_v48  ;;  %v1933_v63 = vadd.f32 %v3938_v14, %v1932_v43  ;;  %v1463_v0 = vsel %vm1448_vm8, %v1430_v34, %v1024_v29 }
 0x313   : > { %v1496_v41 = vsel %vm1481_vm9, %v1463_v0, %v1120_v44 }
 0x314   : > { %2022 = vst.msk [vmem:[%s3949_s19 + $0x18] sm:$0xff] %vm1514_vm10, %v1933_v63 }
 0x317   : > { %v1749_v57 = vpop.f32.mrf.mxu2 }
 0x318   : > { %v1750_v19 = vadd.f32 %v3599_v27, %v1749_v57  ;;  %v1216_v8 = vpop.permute.xlu1 %1215  ;;  %v866_v56 = vpop.permute.xlu0 %865 }
 0x319   : > { %v1529_v4 = vsel %vm1514_vm10, %v1496_v41, %v1216_v8  ;;  %v1414_v60 = vsel %vm1382_vm6, %v1381_v62, %v866_v56 }
 0x31a   : > { %v1795_v9 = vmax.f32 %v1750_v19, 0.0  ;;  %2129 = vmatmul.msk.f32.gmra.mxu0 %vm1556_vm11, %v1529_v4  ;;  %v1447_v51 = vsel %vm1415_vm7, %v1414_v60, %v962_v1 }
 0x31c   : > { %2173 = vmatmul.msk.f32.gmra.mxu3 %vm1283_vm3, %v1795_v9 }
 0x31f   : > { %v1701_v47 = vpop.f32.mrf.mxu0 }
 0x320   : > { %v1702_v52 = vadd.f32 %v3599_v27, %v1701_v47  ;;  %v1058_v49 = vpop.permute.xlu0 %1057  ;;  %v1154_v33 = vpop.permute.xlu1 %1153 }
 0x321   : > { %v1480_v15 = vsel %vm1448_vm8, %v1447_v51, %v1058_v49 }
 0x322   : > { %v1779_v53 = vmax.f32 %v1702_v52, 0.0  ;;  %v1513_v37 = vsel %vm1481_vm9, %v1480_v15, %v1154_v33 }
 0x323   : > { %v1546_v7 = vsel %vm1514_vm10, %v1513_v37, %v1250_v28 }
 0x324   : > { %2146 = vmatmul.msk.f32.gmra.mxu2 %vm1556_vm11, %v1546_v7  ;;  %2157 = vmatmul.msk.f32.gmra.mxu1 %vm1283_vm3, %v1779_v53 }
 0x327   : > { %v1983_v40 = vpop.f32.mrf.mxu3 }
 0x328   : > { %v1984_v12 = vadd.f32 %v3938_v14, %v1983_v40  ;;  %v930_v46 = vpop.permute.xlu0 %929  ;;  %v1026_v6 = vpop.permute.xlu1 %1025 }
 0x329   : > { %v1935_v2 = vpop.f32.mrf.mxu1  ;;  %v1431_v3 = vsel %vm1415_vm7, %v1398_v54, %v930_v46 }
 0x32a   : > { %2039 = vst.msk [vmem:[%s3949_s19 + $0xa0] sm:$0xff] %vm1514_vm10, %v1984_v12  ;;  %v1936_v21 = vadd.f32 %v3938_v14, %v1935_v2  ;;  %v1464_v16 = vsel %vm1448_vm8, %v1431_v3, %v1026_v6  ;;  %v2240_v6 = vld [vmem:[%s4209_s2] ss:$0 sm:$0xff] }
 0x32b   : > { %v1497_v24 = vsel %vm1481_vm9, %v1464_v16, %v1122_v26  ;;  %v1723_v26 = vadd.f32 %v2240_v6, %v3628_v22 }
 0x32c   : > { %2023 = vst.msk [vmem:[%s3949_s19 + $0x20] sm:$0xff] %vm1514_vm10, %v1936_v21 }
 0x32f   : > { %v1752_v36 = vpop.f32.mrf.mxu2 }
 0x330   : > { %v1753_v18 = vadd.f32 %v3599_v27, %v1752_v36  ;;  %v1218_v44 = vpop.permute.xlu0 %1217 }
 0x331   : > { %v1530_v55 = vsel %vm1514_vm10, %v1497_v24, %v1218_v44 }
 0x332   : > { %v1796_v58 = vmax.f32 %v1753_v18, 0.0  ;;  %2130 = vmatmul.msk.f32.gmra.mxu0 %vm1556_vm11, %v1530_v55  ;;  %v1786_v18 = vmax.f32 %v1723_v26, 0.0 }
 0x334   : > { %2174 = vmatmul.msk.f32.gmra.mxu3 %vm1283_vm3, %v1796_v58 }
 0x337   : > { %v1704_v10 = vpop.f32.mrf.mxu0 }
 0x338   : > { %v1705_v31 = vadd.f32 %v3599_v27, %v1704_v10 }
 0x33a   : > { %v1780_v59 = vmax.f32 %v1705_v31, 0.0 }
 0x33c   : > { %2158 = vmatmul.msk.f32.gmra.mxu1 %vm1283_vm3, %v1780_v59 }
 0x33f   : > { %v1986_v39 = vpop.f32.mrf.mxu3 }
 0x340   : > { %v1987_v45 = vadd.f32 %v3938_v14, %v1986_v39 }
 0x341   : > { %v1938_v48 = vpop.f32.mrf.mxu1 }
 0x342   : > { %2040 = vst.msk [vmem:[%s3949_s19 + $0xa8] sm:$0xff] %vm1514_vm10, %v1987_v45  ;;  %v1939_v29 = vadd.f32 %v3938_v14, %v1938_v48 }
 0x344   : > { %2024 = vst.msk [vmem:[%s3949_s19 + $0x28] sm:$0xff] %vm1514_vm10, %v1939_v29 }
 0x347   : > { %v1755_v25 = vpop.f32.mrf.mxu2 }
 0x348   : > { %v1756_v11 = vadd.f32 %v3599_v27, %v1755_v25 }
 0x34a   : > { %v1797_v42 = vmax.f32 %v1756_v11, 0.0 }
 0x34c   : > { %2175 = vmatmul.msk.f32.gmra.mxu3 %vm1283_vm3, %v1797_v42 }
 0x34f   : > { %v1707_v43 = vpop.f32.mrf.mxu0 }
 0x350   : > { %v1708_v34 = vadd.f32 %v3599_v27, %v1707_v43 }
 0x352   : > { %v1781_v63 = vmax.f32 %v1708_v34, 0.0 }
 0x354   : > { %2159 = vmatmul.msk.f32.gmra.mxu1 %vm1283_vm3, %v1781_v63 }
 0x357   : > { %v1989_v0 = vpop.f32.mrf.mxu3 }
 0x358   : > { %v1990_v1 = vadd.f32 %v3938_v14, %v1989_v0 }
 0x359   : > { %v1941_v57 = vpop.f32.mrf.mxu1 }
 0x35a   : > { %2041 = vst.msk [vmem:[%s3949_s19 + $0xb0] sm:$0xff] %vm1514_vm10, %v1990_v1  ;;  %v1942_v41 = vadd.f32 %v3938_v14, %v1941_v57 }
 0x35c   : > { %2025 = vst.msk [vmem:[%s3949_s19 + $0x30] sm:$0xff] %vm1514_vm10, %v1942_v41 }
 0x35f   : > { %v1758_v19 = vpop.f32.mrf.mxu2 }
 0x360   : > { %v1759_v8 = vadd.f32 %v3599_v27, %v1758_v19 }
 0x362   : > { %v1798_v56 = vmax.f32 %v1759_v8, 0.0 }
 0x364   : > { %2176 = vmatmul.msk.f32.gmra.mxu3 %vm1283_vm3, %v1798_v56 }
 0x367   : > { %v1710_v4 = vpop.f32.mrf.mxu0 }
 0x368   : > { %v1711_v13 = vadd.f32 %v3599_v27, %v1710_v4 }
 0x36a   : > { %v1782_v38 = vmax.f32 %v1711_v13, 0.0 }
 0x36c   : > { %2160 = vmatmul.msk.f32.gmra.mxu1 %vm1283_vm3, %v1782_v38 }
 0x36f   : > { %v1992_v9 = vpop.f32.mrf.mxu3 }
 0x370   : > { %v1993_v35 = vadd.f32 %v3938_v14, %v1992_v9 }
 0x371   : > { %v1944_v23 = vpop.f32.mrf.mxu1 }
 0x372   : > { %2042 = vst.msk [vmem:[%s3949_s19 + $0xb8] sm:$0xff] %vm1514_vm10, %v1993_v35  ;;  %v1945_v30 = vadd.f32 %v3938_v14, %v1944_v23 }
 0x374   : > { %2026 = vst.msk [vmem:[%s3949_s19 + $0x38] sm:$0xff] %vm1514_vm10, %v1945_v30 }
 0x377   : > { %v1761_v62 = vpop.f32.mrf.mxu2 }
 0x378   : > { %v1762_v60 = vadd.f32 %v3599_v27, %v1761_v62 }
 0x37a   : > { %v1799_v47 = vmax.f32 %v1762_v60, 0.0 }
 0x37c   : > { %2177 = vmatmul.msk.f32.gmra.mxu3 %vm1283_vm3, %v1799_v47 }
 0x37f   : > { %v1713_v28 = vpop.f32.mrf.mxu0 }
 0x380   : > { %v1714_v51 = vadd.f32 %v3599_v27, %v1713_v28 }
 0x382   : > { %v1783_v52 = vmax.f32 %v1714_v51, 0.0 }
 0x384   : > { %2161 = vmatmul.msk.f32.gmra.mxu1 %vm1283_vm3, %v1783_v52 }
 0x387   : > { %v1995_v49 = vpop.f32.mrf.mxu3 }
 0x388   : > { %v1996_v33 = vadd.f32 %v3938_v14, %v1995_v49 }
 0x389   : > { %v1947_v15 = vpop.f32.mrf.mxu1 }
 0x38a   : > { %2043 = vst.msk [vmem:[%s3949_s19 + $0xc0] sm:$0xff] %vm1514_vm10, %v1996_v33  ;;  %v1948_v53 = vadd.f32 %v3938_v14, %v1947_v15 }
 0x38c   : > { %2027 = vst.msk [vmem:[%s3949_s19 + $0x40] sm:$0xff] %vm1514_vm10, %v1948_v53 }
 0x38f   : > { %v1764_v37 = vpop.f32.mrf.mxu2 }
 0x390   : > { %v1765_v7 = vadd.f32 %v3599_v27, %v1764_v37 }
 0x392   : > { %v1800_v50 = vmax.f32 %v1765_v7, 0.0 }
 0x394   : > { %2178 = vmatmul.msk.f32.gmra.mxu3 %vm1283_vm3, %v1800_v50 }
 0x397   : > { %v1716_v5 = vpop.f32.mrf.mxu0 }
 0x398   : > { %v1717_v20 = vadd.f32 %v3599_v27, %v1716_v5 }
 0x39a   : > { %v1784_v32 = vmax.f32 %v1717_v20, 0.0 }
 0x39c   : > { %2162 = vmatmul.msk.f32.gmra.mxu1 %vm1283_vm3, %v1784_v32 }
 0x39f   : > { %v1998_v40 = vpop.f32.mrf.mxu3 }
 0x3a0   : > { %v1999_v17 = vadd.f32 %v3938_v14, %v1998_v40 }
 0x3a1   : > { %v1950_v61 = vpop.f32.mrf.mxu1 }
 0x3a2   : > { %2044 = vst.msk [vmem:[%s3949_s19 + $0xc8] sm:$0xff] %vm1514_vm10, %v1999_v17  ;;  %v1951_v12 = vadd.f32 %v3938_v14, %v1950_v61 }
 0x3a4   : > { %2028 = vst.msk [vmem:[%s3949_s19 + $0x48] sm:$0xff] %vm1514_vm10, %v1951_v12 }
 0x3a7   : > { %v1767_v46 = vpop.f32.mrf.mxu2 }
 0x3a8   : > { %v1768_v54 = vadd.f32 %v3599_v27, %v1767_v46 }
 0x3aa   : > { %v1801_v2 = vmax.f32 %v1768_v54, 0.0 }
 0x3ac   : > { %2179 = vmatmul.msk.f32.gmra.mxu3 %vm1283_vm3, %v1801_v2 }
 0x3af   : > { %v1719_v3 = vpop.f32.mrf.mxu0 }
 0x3b0   : > { %v1720_v21 = vadd.f32 %v2240_v6, %v1719_v3 }
 0x3b2   : > { %v1785_v16 = vmax.f32 %v1720_v21, 0.0 }
 0x3b4   : > { %2163 = vmatmul.msk.f32.gmra.mxu1 %vm1283_vm3, %v1785_v16 }
 0x3b7   : > { %v2001_v36 = vpop.f32.mrf.mxu3 }
 0x3b8   : > { %v2002_v24 = vadd.f32 %v3938_v14, %v2001_v36 }
 0x3b9   : > { %v1953_v27 = vpop.f32.mrf.mxu1 }
 0x3ba   : > { %2045 = vst.msk [vmem:[%s3949_s19 + $0xd0] sm:$0xff] %vm1514_vm10, %v2002_v24  ;;  %v1954_v44 = vadd.f32 %v3938_v14, %v1953_v27 }
 0x3bc   : > { %2029 = vst.msk [vmem:[%s3949_s19 + $0x50] sm:$0xff] %vm1514_vm10, %v1954_v44  ;;  %2164 = vmatmul.msk.f32.gmra.mxu1 %vm1283_vm3, %v1786_v18 }
 0x3cf   : > { %v2004_v55 = vpop.f32.mrf.mxu3 }
 0x3d0   : > { %v2005_v58 = vadd.f32 %v3938_v14, %v2004_v55 }
 0x3d1   : > { %v1956_v22 = vpop.f32.mrf.mxu1 }
 0x3d2   : > { %2046 = vst.msk [vmem:[%s3949_s19 + $0xd8] sm:$0xff] %vm1514_vm10, %v2005_v58  ;;  %v1957_v10 = vadd.f32 %v3938_v14, %v1956_v22 }
 0x3d4   : > { %2030 = vst.msk [vmem:[%s3949_s19 + $0x58] sm:$0xff] %vm1514_vm10, %v1957_v10 }
 0x3e7   : > { %v2007_v31 = vpop.f32.mrf.mxu3 }
 0x3e8   : > { %v2008_v59 = vadd.f32 %v3938_v14, %v2007_v31 }
 0x3e9   : > { %v1959_v39 = vpop.f32.mrf.mxu1 }
 0x3ea   : > { %2047 = vst.msk [vmem:[%s3949_s19 + $0xe0] sm:$0xff] %vm1514_vm10, %v2008_v59  ;;  %v1960_v45 = vadd.f32 %v3938_v14, %v1959_v39 }
 0x3ec   : > { %2031 = vst.msk [vmem:[%s3949_s19 + $0x60] sm:$0xff] %vm1514_vm10, %v1960_v45 }
 0x3ff   : > { %v2010_v48 = vpop.f32.mrf.mxu3 }
 0x400   : > { %v2011_v29 = vadd.f32 %v3938_v14, %v2010_v48 }
 0x401   : > { %v1962_v25 = vpop.f32.mrf.mxu1 }
 0x402   : > { %2048 = vst.msk [vmem:[%s3949_s19 + $0xe8] sm:$0xff] %vm1514_vm10, %v2011_v29  ;;  %v1963_v11 = vadd.f32 %v3938_v14, %v1962_v25 }
 0x404   : > { %2032 = vst.msk [vmem:[%s3949_s19 + $0x68] sm:$0xff] %vm1514_vm10, %v1963_v11 }
 0x417   : > { %v2013_v42 = vpop.f32.mrf.mxu3 }
 0x418   : > { %v2014_v43 = vadd.f32 %v3938_v14, %v2013_v42 }
 0x419   : > { %v1965_v34 = vpop.f32.mrf.mxu1 }
 0x41a   : > { %2049 = vst.msk [vmem:[%s3949_s19 + $0xf0] sm:$0xff] %vm1514_vm10, %v2014_v43  ;;  %v1966_v63 = vadd.f32 %v3938_v14, %v1965_v34 }
 0x41c   : > { %2033 = vst.msk [vmem:[%s3949_s19 + $0x70] sm:$0xff] %vm1514_vm10, %v1966_v63 }
 0x42f   : > { %v2016_v0 = vpop.f32.mrf.mxu3 }
 0x430   : > { %v2017_v1 = vadd.f32 %v3938_v14, %v2016_v0 }
 0x431   : > { %v1968_v57 = vpop.f32.mrf.mxu1 }
 0x432   : > { %2050 = vst.msk [vmem:[%s3949_s19 + $0xf8] sm:$0xff] %vm1514_vm10, %v2017_v1  ;;  %v1969_v41 = vadd.f32 %v3938_v14, %v1968_v57 }
 0x434   : > { %2034 = vst.msk [vmem:[%s3949_s19 + $0x78] sm:$0xff] %vm1514_vm10, %v1969_v41 }
 0x439   : > { %v1971_v19 = vpop.f32.mrf.mxu1 }
 0x43a   : > { %v1972_v8 = vadd.f32 %v3938_v14, %v1971_v19 }
 0x43c   : > { %2035 = vst.msk [vmem:[%s3949_s19 + $0x80] sm:$0xff] %vm1514_vm10, %v1972_v8 }
 0x43d PF: > { %s15_s18 = sadd.s32 1, %s2247_s18  }
 0x43e   : > { %p12_p4 = scmp.ge.s32.totalorder %s15_s18, 4  }
 0x440   :  { %14 = sbr.rel (!%p12_p4) target bundleno = 1 (0x1), region = 70 }

</bundles_post_ra>
